<compile_context>
chip_gen: v7x
topology: tpu7x:2x2x1
jax: 0.10.0
libtpu: 0.0.40
codegen_flags: <defaults>
</compile_context>

<pallas_src>
import jax
import jax.numpy as jnp
from jax.experimental import pallas as pl
from jax.experimental.pallas import tpu as pltpu

EPS = 1e-5          # PyTorch BatchNorm2d default eps
NUM_CLASSES = 15
NC_PAD = 128        # class dim padded to a full lane width


def _round_up(x, m):
    return ((x + m - 1) // m) * m


# ----------------------------------------------------------------------------
# Pallas kernel: fused wasp + decoder head (3 MXU matmuls, BN folded into W).
#   h1  = relu(x  @ W1' + t1)     # wasp  Conv1x1 + BN + ReLU  (scale folded)
#   h2  = relu(h1 @ W2' + t2)     # dec   Conv1x1 + BN + ReLU  (scale folded)
#   out = h2 @ W3 + b3            # dec   Conv1x1 -> num_classes (padded to 128)
# x/W* are bf16, accumulation + epilogue in f32, output stored as bf16.
# ----------------------------------------------------------------------------
def head_kernel(x_ref, w1_ref, t1_ref, w2_ref, t2_ref, w3_ref, b3_ref, o_ref):
    h = jnp.dot(x_ref[...], w1_ref[...], preferred_element_type=jnp.float32)
    h = jnp.maximum(h + t1_ref[...], 0.0)
    h = jnp.dot(h.astype(jnp.bfloat16), w2_ref[...],
                preferred_element_type=jnp.float32)
    h = jnp.maximum(h + t2_ref[...], 0.0)
    o = jnp.dot(h.astype(jnp.bfloat16), w3_ref[...],
                preferred_element_type=jnp.float32) + b3_ref[...]
    o_ref[...] = o.astype(o_ref.dtype)


def head_pallas(x, w1, t1, w2, t2, w3, b3, *, tm=None, out_dtype=jnp.bfloat16):
    M, K = x.shape
    C1 = w1.shape[1]
    C2 = w2.shape[1]
    NCP = w3.shape[1]                          # padded class dim (128)

    # Adaptive row tile: big tiles amortize the ~0.35 us per-grid-step cost,
    # clamped to M (rounded up to a sublane multiple) so small feature maps
    # don't run mostly-zero MXU work.  VMEM footprint even at tm=1024 is only
    # ~12 MiB, far below every generation's per-TC VMEM.
    if tm is None:
        tm = 1024 if M >= 16 * 1024 else 512
    tm = _round_up(max(8, min(tm, M)), 8)
    grid = (pl.cdiv(M, tm),)                   # ragged last block handled by Pallas

    full = lambda i: (0, 0)                    # weights resident across the grid
    # NOTE: resident weights stay default double-buffered (~1.3 MiB wasted with
    # bf16); pl.Buffered(1) support varies across versions, and VMEM has ample
    # headroom on v5e/v6e/v7x, so keep the default.

    flops = 2 * M * (K * C1 + C1 * C2 + C2 * NCP)
    bytes_accessed = int(
        M * K * 2                                       # bf16 activations in
        + (K * C1 + C1 * C2 + C2 * NCP) * 2             # bf16 weights
        + (C1 + C2 + NCP) * 4                           # f32 shift/bias
        + M * NCP * jnp.dtype(out_dtype).itemsize)      # output

    return pl.pallas_call(
        head_kernel,
        out_shape=jax.ShapeDtypeStruct((M, NCP), out_dtype),
        grid_spec=pltpu.PrefetchScalarGridSpec(
            num_scalar_prefetch=0,
            grid=grid,
            in_specs=[
                pl.BlockSpec((tm, K), lambda i: (i, 0)),   # pixel-row tile
                pl.BlockSpec((K, C1), full),
                pl.BlockSpec((1, C1), full),
                pl.BlockSpec((C1, C2), full),
                pl.BlockSpec((1, C2), full),
                pl.BlockSpec((C2, NCP), full),
                pl.BlockSpec((1, NCP), full),
            ],
            out_specs=pl.BlockSpec((tm, NCP), lambda i: (i, 0)),
        ),
        compiler_params=pltpu.CompilerParams(
            dimension_semantics=("parallel",),       # shards grid across v7x TCs
            vmem_limit_bytes=32 * 1024 * 1024),      # v5e default is 16 MiB
        cost_estimate=pl.CostEstimate(flops=flops, transcendentals=0,
                                      bytes_accessed=bytes_accessed),
    )(x, w1, t1, w2, t2, w3, b3)


# ----------------------------------------------------------------------------
# ResNet-50 backbone (children()[:-2]) in plain JAX, NHWC — glue around kernel.
# TODO(synk): backbone 7x7/3x3 convolutions stay on lax.conv (no single clean
#             Pallas conv kernel in scope for this synthetic module).
# ----------------------------------------------------------------------------
def conv2d(x, w, stride=1, padding=0):
    # x: NHWC, w: HWIO  (TPU-native layout, no XLA-inserted transposes)
    return jax.lax.conv_general_dilated(
        x, w, (stride, stride),
        [(padding, padding), (padding, padding)],
        dimension_numbers=('NHWC', 'HWIO', 'NHWC'))


def maxpool_3x3_s2_p1(x):
    return jax.lax.reduce_window(
        x, -jnp.inf, jax.lax.max,
        window_dimensions=(1, 3, 3, 1),
        window_strides=(1, 2, 2, 1),
        padding=[(0, 0), (1, 1), (1, 1), (0, 0)])


def relu(x):
    return jnp.maximum(x, 0.0)


def bn_eval_identity(x):
    # Deterministic BN stats for the backbone: gamma=1, beta=0, mean=0, var=1.
    return x * (1.0 / jnp.sqrt(1.0 + EPS))


def conv_w(key, oc, ic, k):
    std = (2.0 / (ic * k * k)) ** 0.5
    return std * jax.random.normal(key, (k, k, ic, oc), jnp.float32)   # HWIO


def make_resnet50_params(key):
    params = {}
    key, k0 = jax.random.split(key)
    params['conv1'] = conv_w(k0, 64, 3, 7)
    layers_cfg = [(64, 3, 1), (128, 4, 2), (256, 6, 2), (512, 3, 2)]
    in_c = 64
    blocks = []
    for planes, n_blocks, stride in layers_cfg:
        for b in range(n_blocks):
            key, kb = jax.random.split(key)
            s = stride if b == 0 else 1
            ks = jax.random.split(kb, 4)
            blk = {
                'conv1': conv_w(ks[0], planes, in_c, 1),
                'conv2': conv_w(ks[1], planes, planes, 3),
                'conv3': conv_w(ks[2], planes * 4, planes, 1),
                'stride': s,
            }
            if s != 1 or in_c != planes * 4:
                blk['down'] = conv_w(ks[3], planes * 4, in_c, 1)
            blocks.append(blk)
            in_c = planes * 4
    params['blocks'] = blocks
    return params


def backbone_fwd(x, params):
    x = conv2d(x, params['conv1'], stride=2, padding=3)
    x = relu(bn_eval_identity(x))
    x = maxpool_3x3_s2_p1(x)
    for blk in params['blocks']:
        identity = x
        out = relu(bn_eval_identity(conv2d(x, blk['conv1'])))
        out = relu(bn_eval_identity(
            conv2d(out, blk['conv2'], stride=blk['stride'], padding=1)))
        out = bn_eval_identity(conv2d(out, blk['conv3']))
        if 'down' in blk:
            identity = bn_eval_identity(
                conv2d(x, blk['down'], stride=blk['stride']))
        x = relu(out + identity)
    return x                                  # [N, H/32, W/32, 2048]


# ----------------------------------------------------------------------------
# Head parameters (deterministic) + BN folding into weights/shift + padding.
# ----------------------------------------------------------------------------
def make_head_params(key):
    ks = jax.random.split(key, 16)
    p = {}
    # wasp: Conv2d(2048, 256, 1) + BN(256)
    p['w_wasp'] = 0.02 * jax.random.normal(ks[0], (256, 2048), jnp.float32)
    p['b_wasp'] = 0.01 * jax.random.normal(ks[1], (256,), jnp.float32)
    p['g1'] = 1.0 + 0.1 * jax.random.normal(ks[2], (256,), jnp.float32)
    p['be1'] = 0.05 * jax.random.normal(ks[3], (256,), jnp.float32)
    p['m1'] = 0.05 * jax.random.normal(ks[4], (256,), jnp.float32)
    p['v1'] = 1.0 + 0.1 * jax.random.uniform(ks[5], (256,), jnp.float32)
    # decoder: Conv2d(256,256,1) + BN(256) + ReLU + Conv2d(256, num_classes, 1)
    p['w_d1'] = 0.05 * jax.random.normal(ks[6], (256, 256), jnp.float32)
    p['b_d1'] = 0.01 * jax.random.normal(ks[7], (256,), jnp.float32)
    p['g2'] = 1.0 + 0.1 * jax.random.normal(ks[8], (256,), jnp.float32)
    p['be2'] = 0.05 * jax.random.normal(ks[9], (256,), jnp.float32)
    p['m2'] = 0.05 * jax.random.normal(ks[10], (256,), jnp.float32)
    p['v2'] = 1.0 + 0.1 * jax.random.uniform(ks[11], (256,), jnp.float32)
    p['w_d2'] = 0.05 * jax.random.normal(ks[12], (NUM_CLASSES, 256), jnp.float32)
    p['b_d2'] = 0.01 * jax.random.normal(ks[13], (NUM_CLASSES,), jnp.float32)
    return p


def fold_head_params(p):
    # BN(conv(x)) = (x@W + b - mean) * g/sqrt(v+eps) + beta
    #             = x @ (W * s) + ((b - mean) * s + beta)     -> W folded, t shift
    s1 = p['g1'] / jnp.sqrt(p['v1'] + EPS)
    t1 = (p['b_wasp'] - p['m1']) * s1 + p['be1']
    s2 = p['g2'] / jnp.sqrt(p['v2'] + EPS)
    t2 = (p['b_d1'] - p['m2']) * s2 + p['be2']
    w1 = (p['w_wasp'].T * s1[None, :]).astype(jnp.bfloat16)   # [2048, 256]
    w2 = (p['w_d1'].T * s2[None, :]).astype(jnp.bfloat16)     # [256, 256]
    # Pad class dim 15 -> 128: lane-dense stores + MXU-shaped final matmul.
    w3 = jnp.pad(p['w_d2'].T, ((0, 0), (0, NC_PAD - NUM_CLASSES)))
    w3 = w3.astype(jnp.bfloat16)                               # [256, 128]
    b3 = jnp.pad(p['b_d2'], (0, NC_PAD - NUM_CLASSES))
    return (w1, t1.reshape(1, -1), w2, t2.reshape(1, -1), w3, b3.reshape(1, -1))


def head_ref(xm, w1, t1, w2, t2, w3, b3):
    # Plain-JAX reference: identical folded bf16 weights, f32 accumulation.
    h = jnp.dot(xm, w1, preferred_element_type=jnp.float32)
    h = jnp.maximum(h + t1, 0.0)
    h = jnp.dot(h.astype(jnp.bfloat16), w2, preferred_element_type=jnp.float32)
    h = jnp.maximum(h + t2, 0.0)
    return (jnp.dot(h.astype(jnp.bfloat16), w3,
                    preferred_element_type=jnp.float32) + b3)


# ----------------------------------------------------------------------------
# Full unipose forward (stride == 8 -> no interpolation branch).
# ----------------------------------------------------------------------------
def unipose_forward(x_nchw, bb_params, head_folded, *, head_fn=head_pallas):
    x = jnp.transpose(x_nchw, (0, 2, 3, 1))                   # NHWC backbone
    feat = backbone_fwd(x, bb_params)                         # [N,h,w,2048]
    n, h, w, c = feat.shape
    # bf16 cast at the handoff so XLA fuses it with the backbone's last
    # residual-add/ReLU; the f32 [M, 2048] map is never re-read.
    xm = feat.reshape(n * h * w, c).astype(jnp.bfloat16)      # pixels x C
    out_m = head_fn(xm, *head_folded)                         # [M, 128]
    out = out_m[:, :NUM_CLASSES].astype(jnp.float32)
    out = out.reshape(n, h, w, NUM_CLASSES).transpose(0, 3, 1, 2)  # NCHW heatmaps
    return out


if __name__ == "__main__":
    key = jax.random.PRNGKey(0)
    k_x, k_bb, k_head, k_big = jax.random.split(key, 4)

    # Small but structurally-faithful input: batch=2, RGB, 64x64 (stride-32
    # backbone -> 2x2 feature map with 2048 channels -> M = 8 head rows).
    N, H, W = 2, 64, 64
    x = jax.random.normal(k_x, (N, 3, H, W), jnp.float32)

    bb_params = make_resnet50_params(k_bb)
    head_params = make_head_params(k_head)
    head_folded = fold_head_params(head_params)

    fwd = jax.jit(lambda inp: unipose_forward(inp, bb_params, head_folded))
    out = fwd(x)
    jax.block_until_ready(out)
    assert out.shape == (N, NUM_CLASSES, H // 32, W // 32), out.shape

    # 1) Full-model check: Pallas head vs. plain-JAX head (identical backbone
    #    and identical folded bf16 / f32-accumulate recipe).
    ref_fwd = jax.jit(lambda inp: unipose_forward(inp, bb_params, head_folded,
                                                  head_fn=head_ref))
    ref = ref_fwd(x)
    jax.block_until_ready(ref)
    denom = float(jnp.max(jnp.abs(ref))) + 1e-6
    err = float(jnp.max(jnp.abs(out - ref))) / denom
    assert err < 1e-2, f"Pallas head mismatch (full model), max rel err = {err}"

    # 2) Head-only check exercising the multi-step grid AND the ragged last
    #    block (M=300, tm=128 -> grid=3, last block has 44 valid rows whose
    #    garbage neighbours are masked on store).
    M_big = 300
    xm_big = jax.random.normal(k_big, (M_big, 2048),
                               jnp.float32).astype(jnp.bfloat16)
    got = head_pallas(xm_big, *head_folded, tm=128).astype(jnp.float32)
    jax.block_until_ready(got)
    want = head_ref(xm_big, *head_folded)
    denom = float(jnp.max(jnp.abs(want))) + 1e-6
    err = float(jnp.max(jnp.abs(got - want))) / denom
    assert err < 1e-2, f"Pallas head mismatch (ragged grid), max rel err = {err}"

    print("KERNEL_OK")
</pallas_src>

<mosaic_0001>
module attributes {stable_mosaic.version = 11 : i64} {
  func.func @head_kernel(%arg0: i32, %arg1: memref<8x2048xbf16, #tpu.memory_space<vmem>>, %arg2: memref<2048x256xbf16, #tpu.memory_space<vmem>>, %arg3: memref<1x256xf32, #tpu.memory_space<vmem>>, %arg4: memref<256x256xbf16, #tpu.memory_space<vmem>>, %arg5: memref<1x256xf32, #tpu.memory_space<vmem>>, %arg6: memref<256x128xbf16, #tpu.memory_space<vmem>>, %arg7: memref<1x128xf32, #tpu.memory_space<vmem>>, %arg8: memref<8x128xbf16, #tpu.memory_space<vmem>>) attributes {dimension_semantics = [#tpu.dimension_semantics<parallel>], iteration_bounds = array<i64: 1>, scalar_prefetch = 0 : i64, scratch_operands = 0 : i64, tpu.core_type = #tpu.core_type<tc>, window_params = [{transform_indices = @transform_0, window_bounds = array<i64: 8, 2048>}, {pipeline_mode = #tpu.pipeline_mode<synchronous>, transform_indices = @transform_1, window_bounds = array<i64: 2048, 256>}, {pipeline_mode = #tpu.pipeline_mode<synchronous>, transform_indices = @transform_2, window_bounds = array<i64: 1, 256>}, {pipeline_mode = #tpu.pipeline_mode<synchronous>, transform_indices = @transform_3, window_bounds = array<i64: 256, 256>}, {pipeline_mode = #tpu.pipeline_mode<synchronous>, transform_indices = @transform_4, window_bounds = array<i64: 1, 256>}, {pipeline_mode = #tpu.pipeline_mode<synchronous>, transform_indices = @transform_5, window_bounds = array<i64: 256, 128>}, {pipeline_mode = #tpu.pipeline_mode<synchronous>, transform_indices = @transform_6, window_bounds = array<i64: 1, 128>}, {transform_indices = @transform_7, window_bounds = array<i64: 8, 128>}]} {
    %c0 = arith.constant 0 : index
    %c0_0 = arith.constant 0 : index
    %0 = vector.load %arg1[%c0, %c0_0] : memref<8x2048xbf16, #tpu.memory_space<vmem>>, vector<8x2048xbf16>
    %c0_1 = arith.constant 0 : index
    %c0_2 = arith.constant 0 : index
    %1 = vector.load %arg2[%c0_1, %c0_2] : memref<2048x256xbf16, #tpu.memory_space<vmem>>, vector<2048x256xbf16>
    %cst = arith.constant dense<0.000000e+00> : vector<8x256xf32>
    %2 = tpu.matmul %0, %1, %cst {dimension_numbers = #tpu.dot_dimension_numbers<[1], [0], [0], [1], [0, 0, 1, 1], [], []>} : vector<8x2048xbf16>, vector<2048x256xbf16>, vector<8x256xf32> -> vector<8x256xf32>
    %c0_3 = arith.constant 0 : index
    %c0_4 = arith.constant 0 : index
    %3 = vector.load %arg3[%c0_3, %c0_4] : memref<1x256xf32, #tpu.memory_space<vmem>>, vector<1x256xf32>
    %4 = vector.broadcast %3 : vector<1x256xf32> to vector<8x256xf32>
    %5 = arith.addf %2, %4 : vector<8x256xf32>
    %cst_5 = arith.constant 0.000000e+00 : f32
    %6 = vector.broadcast %cst_5 : f32 to vector<8x256xf32>
    %7 = arith.maximumf %5, %6 : vector<8x256xf32>
    %8 = arith.truncf %7 : vector<8x256xf32> to vector<8x256xbf16>
    %c0_6 = arith.constant 0 : index
    %c0_7 = arith.constant 0 : index
    %9 = vector.load %arg4[%c0_6, %c0_7] : memref<256x256xbf16, #tpu.memory_space<vmem>>, vector<256x256xbf16>
    %cst_8 = arith.constant dense<0.000000e+00> : vector<8x256xf32>
    %10 = tpu.matmul %8, %9, %cst_8 {dimension_numbers = #tpu.dot_dimension_numbers<[1], [0], [0], [1], [0, 0, 1, 1], [], []>} : vector<8x256xbf16>, vector<256x256xbf16>, vector<8x256xf32> -> vector<8x256xf32>
    %c0_9 = arith.constant 0 : index
    %c0_10 = arith.constant 0 : index
    %11 = vector.load %arg5[%c0_9, %c0_10] : memref<1x256xf32, #tpu.memory_space<vmem>>, vector<1x256xf32>
    %12 = vector.broadcast %11 : vector<1x256xf32> to vector<8x256xf32>
    %13 = arith.addf %10, %12 : vector<8x256xf32>
    %cst_11 = arith.constant 0.000000e+00 : f32
    %14 = vector.broadcast %cst_11 : f32 to vector<8x256xf32>
    %15 = arith.maximumf %13, %14 : vector<8x256xf32>
    %16 = arith.truncf %15 : vector<8x256xf32> to vector<8x256xbf16>
    %c0_12 = arith.constant 0 : index
    %c0_13 = arith.constant 0 : index
    %17 = vector.load %arg6[%c0_12, %c0_13] : memref<256x128xbf16, #tpu.memory_space<vmem>>, vector<256x128xbf16>
    %cst_14 = arith.constant dense<0.000000e+00> : vector<8x128xf32>
    %18 = tpu.matmul %16, %17, %cst_14 {dimension_numbers = #tpu.dot_dimension_numbers<[1], [0], [0], [1], [0, 0, 1, 1], [], []>} : vector<8x256xbf16>, vector<256x128xbf16>, vector<8x128xf32> -> vector<8x128xf32>
    %c0_15 = arith.constant 0 : index
    %c0_16 = arith.constant 0 : index
    %19 = vector.load %arg7[%c0_15, %c0_16] : memref<1x128xf32, #tpu.memory_space<vmem>>, vector<1x128xf32>
    %20 = vector.broadcast %19 : vector<1x128xf32> to vector<8x128xf32>
    %21 = arith.addf %18, %20 : vector<8x128xf32>
    %22 = arith.truncf %21 : vector<8x128xf32> to vector<8x128xbf16>
    %c0_17 = arith.constant 0 : index
    %c0_18 = arith.constant 0 : index
    %23 = vector.load %arg8[%c0_17, %c0_18] : memref<8x128xbf16, #tpu.memory_space<vmem>>, vector<8x128xbf16>
    tpu.vector_store %arg8[%c0_17, %c0_18], %22 {strides = array<i32>} : memref<8x128xbf16, #tpu.memory_space<vmem>>, vector<8x128xbf16>,
    return
  }
  func.func @transform_0(%arg0: i32) -> (i32, i32) {
    %c0_i32 = arith.constant 0 : i32
    %c0_i32_0 = arith.constant 0 : i32
    return %arg0, %c0_i32 : i32, i32
  }
  func.func @transform_1(%arg0: i32) -> (i32, i32) {
    %c0_i32 = arith.constant 0 : i32
    %c0_i32_0 = arith.constant 0 : i32
    %c0_i32_1 = arith.constant 0 : i32
    return %c0_i32, %c0_i32_0 : i32, i32
  }
  func.func @transform_2(%arg0: i32) -> (i32, i32) {
    %c0_i32 = arith.constant 0 : i32
    %c0_i32_0 = arith.constant 0 : i32
    %c0_i32_1 = arith.constant 0 : i32
    return %c0_i32, %c0_i32_0 : i32, i32
  }
  func.func @transform_3(%arg0: i32) -> (i32, i32) {
    %c0_i32 = arith.constant 0 : i32
    %c0_i32_0 = arith.constant 0 : i32
    %c0_i32_1 = arith.constant 0 : i32
    return %c0_i32, %c0_i32_0 : i32, i32
  }
  func.func @transform_4(%arg0: i32) -> (i32, i32) {
    %c0_i32 = arith.constant 0 : i32
    %c0_i32_0 = arith.constant 0 : i32
    %c0_i32_1 = arith.constant 0 : i32
    return %c0_i32, %c0_i32_0 : i32, i32
  }
  func.func @transform_5(%arg0: i32) -> (i32, i32) {
    %c0_i32 = arith.constant 0 : i32
    %c0_i32_0 = arith.constant 0 : i32
    %c0_i32_1 = arith.constant 0 : i32
    return %c0_i32, %c0_i32_0 : i32, i32
  }
  func.func @transform_6(%arg0: i32) -> (i32, i32) {
    %c0_i32 = arith.constant 0 : i32
    %c0_i32_0 = arith.constant 0 : i32
    %c0_i32_1 = arith.constant 0 : i32
    return %c0_i32, %c0_i32_0 : i32, i32
  }
  func.func @transform_7(%arg0: i32) -> (i32, i32) {
    %c0_i32 = arith.constant 0 : i32
    %c0_i32_0 = arith.constant 0 : i32
    return %arg0, %c0_i32 : i32, i32
  }
}

</mosaic_0001>

<bundles_post_ra>
// kernel: _lambda_.1
= control target key start
LH: loop header
LB: loop body
LE: loop exit
PB: predicated region body
PF: predicated region fallthrough
CT: control target
= control target key end

     0   :  { %s4260_s1 = inlined_call_operand.vmem [shape: bf16[2048,256], index: 1, kind: input, shape index: {}]   ;;  %s4261_s0 = inlined_call_operand.vmem [shape: bf16[8,2048], index: 0, kind: input, shape index: {}]   ;;  %s4262_s3 = inlined_call_operand.vmem [shape: bf16[256,256], index: 3, kind: input, shape index: {}]   ;;  %s4263_s5 = inlined_call_operand.vmem [shape: bf16[256,128], index: 5, kind: input, shape index: {}]   ;;  %s4264_s2 = inlined_call_operand.vmem [shape: f32[1,256], index: 2, kind: input, shape index: {}]   ;;  %s4265_s4 = inlined_call_operand.vmem [shape: f32[1,256], index: 4, kind: input, shape index: {}]   ;;  %s4266_s6 = inlined_call_operand.vmem [shape: f32[1,128], index: 6, kind: input, shape index: {}]   ;;  %s4267_s7 = inlined_call_operand.vmem [shape: bf16[8,128], index: 7, kind: output, shape index: {}]  }
   0x1   :  { %v2772_v0 = vld [vmem:[%s4260_s1 + $0x4] ss:$8 sps:$4 sm:$0xff]   ;;  %v2776_v2 = vld [vmem:[%s4260_s1] ss:$8 sps:$4 sm:$0xff]   ;;  %v2778_v4 = vld [vmem:[%s4260_s1 + $0x14] ss:$8 sps:$4 sm:$0xff]  }
   0x2   :  { %v2774_v1 = vld [vmem:[%s4260_s1 + $0x304] ss:$8 sps:$4 sm:$0xff]   ;;  %1639 = vmatprep.subr.bf16.mxu1 %v2772_v0  ;;  %v2777_v3 = vld [vmem:[%s4260_s1 + $0x300] ss:$8 sps:$4 sm:$0xff]   ;;  %v2780_v5 = vld [vmem:[%s4260_s1 + $0x314] ss:$8 sps:$4 sm:$0xff]  }
   0x3   :  { %1762 = vmatprep.subr.bf16.mxu0 %v2774_v1  ;;  %1640 = vmatpush1.bf16.msra.mxu1 %v2776_v2  ;;  %v2782_v6 = vld [vmem:[%s4260_s1 + $0x10] ss:$8 sps:$4 sm:$0xff]   ;;  %v2784_v8 = vld [vmem:[%s4260_s1 + $0x24] ss:$8 sps:$4 sm:$0xff]   ;;  %v2788_v10 = vld [vmem:[%s4260_s1 + $0x20] ss:$8 sps:$4 sm:$0xff]  }
   0x4   :  { %1763 = vmatpush1.bf16.msra.mxu0 %v2777_v3  ;;  %1641 = vmatprep.subr.bf16.mxu1 %v2778_v4  ;;  %v2783_v7 = vld [vmem:[%s4260_s1 + $0x310] ss:$8 sps:$4 sm:$0xff]   ;;  %v2786_v9 = vld [vmem:[%s4260_s1 + $0x324] ss:$8 sps:$4 sm:$0xff]   ;;  %v2789_v11 = vld [vmem:[%s4260_s1 + $0x320] ss:$8 sps:$4 sm:$0xff]  }
   0x5   :  { %1764 = vmatprep.subr.bf16.mxu0 %v2780_v5  ;;  %v2790_v12 = vld [vmem:[%s4260_s1 + $0x34] ss:$8 sps:$4 sm:$0xff]   ;;  %v2794_v14 = vld [vmem:[%s4260_s1 + $0x30] ss:$8 sps:$4 sm:$0xff]   ;;  %v2796_v16 = vld [vmem:[%s4260_s1 + $0x44] ss:$8 sps:$4 sm:$0xff]  }
   0x6   :  { %v2792_v13 = vld [vmem:[%s4260_s1 + $0x334] ss:$8 sps:$4 sm:$0xff]   ;;  %v2795_v15 = vld [vmem:[%s4260_s1 + $0x330] ss:$8 sps:$4 sm:$0xff]   ;;  %v2798_v17 = vld [vmem:[%s4260_s1 + $0x344] ss:$8 sps:$4 sm:$0xff]  }
   0x7   :  { %1642 = vmatpush1.bf16.msra.mxu1 %v2782_v6  ;;  %v2800_v18 = vld [vmem:[%s4260_s1 + $0x40] ss:$8 sps:$4 sm:$0xff]   ;;  %v2802_v20 = vld [vmem:[%s4260_s1 + $0x54] ss:$8 sps:$4 sm:$0xff]   ;;  %v2806_v22 = vld [vmem:[%s4260_s1 + $0x50] ss:$8 sps:$4 sm:$0xff]  }
   0x8   :  { %1765 = vmatpush1.bf16.msra.mxu0 %v2783_v7  ;;  %1643 = vmatprep.subr.bf16.mxu1 %v2784_v8  ;;  %v2801_v19 = vld [vmem:[%s4260_s1 + $0x340] ss:$8 sps:$4 sm:$0xff]   ;;  %v2804_v21 = vld [vmem:[%s4260_s1 + $0x354] ss:$8 sps:$4 sm:$0xff]   ;;  %v2807_v23 = vld [vmem:[%s4260_s1 + $0x350] ss:$8 sps:$4 sm:$0xff]  }
   0x9   :  { %1766 = vmatprep.subr.bf16.mxu0 %v2786_v9  ;;  %v2808_v24 = vld [vmem:[%s4260_s1 + $0x64] ss:$8 sps:$4 sm:$0xff]   ;;  %v2812_v26 = vld [vmem:[%s4260_s1 + $0x60] ss:$8 sps:$4 sm:$0xff]   ;;  %v2814_v28 = vld [vmem:[%s4260_s1 + $0x74] ss:$8 sps:$4 sm:$0xff]  }
   0xa   :  { %v2810_v25 = vld [vmem:[%s4260_s1 + $0x364] ss:$8 sps:$4 sm:$0xff]   ;;  %v2813_v27 = vld [vmem:[%s4260_s1 + $0x360] ss:$8 sps:$4 sm:$0xff]   ;;  %v2816_v29 = vld [vmem:[%s4260_s1 + $0x374] ss:$8 sps:$4 sm:$0xff]  }
   0xb   :  { %1644 = vmatpush1.bf16.msra.mxu1 %v2788_v10  ;;  %v2818_v30 = vld [vmem:[%s4260_s1 + $0x70] ss:$8 sps:$4 sm:$0xff]   ;;  %v2820_v32 = vld [vmem:[%s4260_s1 + $0x84] ss:$8 sps:$4 sm:$0xff]   ;;  %v2824_v34 = vld [vmem:[%s4260_s1 + $0x80] ss:$8 sps:$4 sm:$0xff]  }
   0xc   :  { %1767 = vmatpush1.bf16.msra.mxu0 %v2789_v11  ;;  %1645 = vmatprep.subr.bf16.mxu1 %v2790_v12  ;;  %v2819_v31 = vld [vmem:[%s4260_s1 + $0x370] ss:$8 sps:$4 sm:$0xff]   ;;  %v2822_v33 = vld [vmem:[%s4260_s1 + $0x384] ss:$8 sps:$4 sm:$0xff]   ;;  %v2825_v35 = vld [vmem:[%s4260_s1 + $0x380] ss:$8 sps:$4 sm:$0xff]  }
   0xd   :  { %1768 = vmatprep.subr.bf16.mxu0 %v2792_v13  ;;  %v2826_v36 = vld [vmem:[%s4260_s1 + $0x94] ss:$8 sps:$4 sm:$0xff]   ;;  %v2830_v38 = vld [vmem:[%s4260_s1 + $0x90] ss:$8 sps:$4 sm:$0xff]   ;;  %v2832_v40 = vld [vmem:[%s4260_s1 + $0xa4] ss:$8 sps:$4 sm:$0xff]  }
   0xe   :  { %v2828_v37 = vld [vmem:[%s4260_s1 + $0x394] ss:$8 sps:$4 sm:$0xff]   ;;  %v2831_v39 = vld [vmem:[%s4260_s1 + $0x390] ss:$8 sps:$4 sm:$0xff]   ;;  %v2834_v41 = vld [vmem:[%s4260_s1 + $0x3a4] ss:$8 sps:$4 sm:$0xff]  }
   0xf   :  { %1646 = vmatpush1.bf16.msra.mxu1 %v2794_v14  ;;  %v2836_v42 = vld [vmem:[%s4260_s1 + $0xa0] ss:$8 sps:$4 sm:$0xff]   ;;  %v2838_v44 = vld [vmem:[%s4260_s1 + $0xb4] ss:$8 sps:$4 sm:$0xff]   ;;  %v2842_v47 = vld [vmem:[%s4260_s1 + $0xb0] ss:$8 sps:$4 sm:$0xff]  }
  0x10   :  { %1769 = vmatpush1.bf16.msra.mxu0 %v2795_v15  ;;  %1647 = vmatprep.subr.bf16.mxu1 %v2796_v16  ;;  %v2837_v43 = vld [vmem:[%s4260_s1 + $0x3a0] ss:$8 sps:$4 sm:$0xff]   ;;  %v2840_v45 = vld [vmem:[%s4260_s1 + $0x3b4] ss:$8 sps:$4 sm:$0xff]   ;;  %v2843_v49 = vld [vmem:[%s4260_s1 + $0x3b0] ss:$8 sps:$4 sm:$0xff]  }
  0x11   :  { %1770 = vmatprep.subr.bf16.mxu0 %v2798_v17  ;;  %v27_v46 = vld [vmem:[%s4261_s0] sm:$0xff]  ;;  %v30_v50 = vld [vmem:[%s4261_s0 + $0x18] sm:$0xff] }
  0x12   :  { %v2402_v48 = vcombine.high %v27_v46, %v27_v46  ;;  %v2844_v51 = vld [vmem:[%s4260_s1 + $0xc4] ss:$8 sps:$4 sm:$0xff]   ;;  %v2408_v53 = vcombine.high %v30_v50, %v30_v50  ;;  %v2848_v54 = vld [vmem:[%s4260_s1 + $0xc0] ss:$8 sps:$4 sm:$0xff]   ;;  %v2850_v56 = vld [vmem:[%s4260_s1 + $0xd4] ss:$8 sps:$4 sm:$0xff]   ;;  %v2401_v6 = vcombine.low %v27_v46, %v27_v46  ;;  %v2407_v7 = vcombine.low %v30_v50, %v30_v50 }
  0x13   :  { %1648 = vmatpush1.bf16.msra.mxu1 %v2800_v18  ;;  %v2846_v52 = vld [vmem:[%s4260_s1 + $0x3c4] ss:$8 sps:$4 sm:$0xff]   ;;  %v2849_v55 = vld [vmem:[%s4260_s1 + $0x3c0] ss:$8 sps:$4 sm:$0xff]   ;;  %v2852_v57 = vld [vmem:[%s4260_s1 + $0x3d4] ss:$8 sps:$4 sm:$0xff]  }
  0x14   :  { %1771 = vmatpush1.bf16.msra.mxu0 %v2801_v19  ;;  %1649 = vmatprep.subr.bf16.mxu1 %v2802_v20  ;;  %v2854_v58 = vld [vmem:[%s4260_s1 + $0xd0] ss:$8 sps:$4 sm:$0xff]   ;;  %v2856_v60 = vld [vmem:[%s4260_s1 + $0xe4] ss:$8 sps:$4 sm:$0xff]   ;;  %v2860_v62 = vld [vmem:[%s4260_s1 + $0xe0] ss:$8 sps:$4 sm:$0xff]  }
  0x15   :  { %1772 = vmatprep.subr.bf16.mxu0 %v2804_v21  ;;  %1671 = vmatprep.mubr.bf16.mxu1 %v2402_v48  ;;  %v2855_v59 = vld [vmem:[%s4260_s1 + $0x3d0] ss:$8 sps:$4 sm:$0xff]   ;;  %v2858_v61 = vld [vmem:[%s4260_s1 + $0x3e4] ss:$8 sps:$4 sm:$0xff]   ;;  %v2861_v63 = vld [vmem:[%s4260_s1 + $0x3e0] ss:$8 sps:$4 sm:$0xff]  }
  0x16   :  { %1794 = vmatprep.mubr.bf16.mxu0 %v2408_v53  ;;  %v2862_v0 = vld [vmem:[%s4260_s1 + $0xf4] ss:$8 sps:$4 sm:$0xff]   ;;  %v2866_v2 = vld [vmem:[%s4260_s1 + $0xf0] ss:$8 sps:$4 sm:$0xff]   ;;  %v2872_v4 = vld [vmem:[%s4260_s1 + $0x104] ss:$8 sps:$4 sm:$0xff]  }
  0x17   :  { %1650 = vmatpush1.bf16.msra.mxu1 %v2806_v22  ;;  %v2864_v1 = vld [vmem:[%s4260_s1 + $0x3f4] ss:$8 sps:$4 sm:$0xff]   ;;  %v2867_v3 = vld [vmem:[%s4260_s1 + $0x3f0] ss:$8 sps:$4 sm:$0xff]   ;;  %v2877_v5 = vld [vmem:[%s4260_s1 + $0x404] ss:$8 sps:$4 sm:$0xff]  }
  0x18   :  { %1773 = vmatpush1.bf16.msra.mxu0 %v2807_v23  ;;  %1651 = vmatprep.subr.bf16.mxu1 %v2808_v24  ;;  %v2870_v8 = vld [vmem:[%s4260_s1 + $0x100] ss:$8 sps:$4 sm:$0xff]   ;;  %v2880_v10 = vld [vmem:[%s4260_s1 + $0x114] ss:$8 sps:$4 sm:$0xff]   ;;  %v2878_v12 = vld [vmem:[%s4260_s1 + $0x110] ss:$8 sps:$4 sm:$0xff]  }
  0x19   :  { %1774 = vmatprep.subr.bf16.mxu0 %v2810_v25  ;;  %v2875_v9 = vld [vmem:[%s4260_s1 + $0x400] ss:$8 sps:$4 sm:$0xff]   ;;  %v2883_v11 = vld [vmem:[%s4260_s1 + $0x414] ss:$8 sps:$4 sm:$0xff]   ;;  %v2881_v13 = vld [vmem:[%s4260_s1 + $0x410] ss:$8 sps:$4 sm:$0xff]  }
  0x1a   :  { %v2886_v14 = vld [vmem:[%s4260_s1 + $0x124] ss:$8 sps:$4 sm:$0xff]   ;;  %v2884_v16 = vld [vmem:[%s4260_s1 + $0x120] ss:$8 sps:$4 sm:$0xff]   ;;  %v2892_v18 = vld [vmem:[%s4260_s1 + $0x134] ss:$8 sps:$4 sm:$0xff]  }
  0x1b   :  { %1652 = vmatpush1.bf16.msra.mxu1 %v2812_v26  ;;  %v2889_v15 = vld [vmem:[%s4260_s1 + $0x424] ss:$8 sps:$4 sm:$0xff]   ;;  %v2887_v17 = vld [vmem:[%s4260_s1 + $0x420] ss:$8 sps:$4 sm:$0xff]   ;;  %v2895_v19 = vld [vmem:[%s4260_s1 + $0x434] ss:$8 sps:$4 sm:$0xff]  }
  0x1c   :  { %1775 = vmatpush1.bf16.msra.mxu0 %v2813_v27  ;;  %1653 = vmatprep.subr.bf16.mxu1 %v2814_v28  ;;  %v2890_v20 = vld [vmem:[%s4260_s1 + $0x130] ss:$8 sps:$4 sm:$0xff]   ;;  %v2898_v22 = vld [vmem:[%s4260_s1 + $0x144] ss:$8 sps:$4 sm:$0xff]   ;;  %v2896_v24 = vld [vmem:[%s4260_s1 + $0x140] ss:$8 sps:$4 sm:$0xff]  }
  0x1d   :  { %1776 = vmatprep.subr.bf16.mxu0 %v2816_v29  ;;  %v2893_v21 = vld [vmem:[%s4260_s1 + $0x430] ss:$8 sps:$4 sm:$0xff]   ;;  %v2901_v23 = vld [vmem:[%s4260_s1 + $0x444] ss:$8 sps:$4 sm:$0xff]   ;;  %v2899_v25 = vld [vmem:[%s4260_s1 + $0x440] ss:$8 sps:$4 sm:$0xff]  }
  0x1e   :  { %v2904_v26 = vld [vmem:[%s4260_s1 + $0x154] ss:$8 sps:$4 sm:$0xff]   ;;  %v2902_v28 = vld [vmem:[%s4260_s1 + $0x150] ss:$8 sps:$4 sm:$0xff]   ;;  %v2934_v50 = vld [vmem:[%s4260_s1 + $0x1a4] ss:$8 sps:$4 sm:$0xff]  }
  0x1f   :  { %1654 = vmatpush1.bf16.msra.mxu1 %v2818_v30  ;;  %v2907_v27 = vld [vmem:[%s4260_s1 + $0x454] ss:$8 sps:$4 sm:$0xff]   ;;  %v2905_v29 = vld [vmem:[%s4260_s1 + $0x450] ss:$8 sps:$4 sm:$0xff]   ;;  %v2910_v30 = vld [vmem:[%s4260_s1 + $0x164] ss:$8 sps:$4 sm:$0xff]  }
  0x20   :  { %1777 = vmatpush1.bf16.msra.mxu0 %v2819_v31  ;;  %1655 = vmatprep.subr.bf16.mxu1 %v2820_v32  ;;  %v2913_v31 = vld [vmem:[%s4260_s1 + $0x464] ss:$8 sps:$4 sm:$0xff]   ;;  %v2928_v46 = vld [vmem:[%s4260_s1 + $0x194] ss:$8 sps:$4 sm:$0xff]   ;;  %v2926_v48 = vld [vmem:[%s4260_s1 + $0x190] ss:$8 sps:$4 sm:$0xff]  }
  0x21   :  { %1778 = vmatprep.subr.bf16.mxu0 %v2822_v33  ;;  %v3555_v32 = vld [vmem:[%s4261_s0 + $0x8] sm:$0xff] }
  0x22   :  { %v2908_v33 = vld [vmem:[%s4260_s1 + $0x160] ss:$8 sps:$4 sm:$0xff]  }
  0x23   :  { %1656 = vmatpush1.bf16.msra.mxu1 %v2824_v34  ;;  %v2911_v34 = vld [vmem:[%s4260_s1 + $0x460] ss:$8 sps:$4 sm:$0xff]  }
  0x24   :  { %1779 = vmatpush1.bf16.msra.mxu0 %v2825_v35  ;;  %1657 = vmatprep.subr.bf16.mxu1 %v2826_v36  ;;  %v2404_v35 = vcombine.high %v3555_v32, %v3555_v32  ;;  %v3568_v36 = vld [vmem:[%s4261_s0 + $0x20] sm:$0xff] }
  0x25   :  { %1780 = vmatprep.subr.bf16.mxu0 %v2828_v37  ;;  %v2916_v37 = vld [vmem:[%s4260_s1 + $0x174] ss:$8 sps:$4 sm:$0xff]   ;;  %v2935_v53 = vld [vmem:[%s4260_s1 + $0x4a0] ss:$8 sps:$4 sm:$0xff]  }
  0x27   :  { %1658 = vmatpush1.bf16.msra.mxu1 %v2830_v38  ;;  %v2410_v38 = vcombine.high %v3568_v36, %v3568_v36 }
  0x28   :  { %1781 = vmatpush1.bf16.msra.mxu0 %v2831_v39  ;;  %1659 = vmatprep.subr.bf16.mxu1 %v2832_v40  ;;  %v2919_v39 = vld [vmem:[%s4260_s1 + $0x474] ss:$8 sps:$4 sm:$0xff]   ;;  %v2914_v40 = vld [vmem:[%s4260_s1 + $0x170] ss:$8 sps:$4 sm:$0xff]  }
  0x29   :  { %1782 = vmatprep.subr.bf16.mxu0 %v2834_v41  ;;  %v2917_v41 = vld [vmem:[%s4260_s1 + $0x470] ss:$8 sps:$4 sm:$0xff]  }
  0x2b   :  { %1660 = vmatpush1.bf16.msra.mxu1 %v2836_v42  ;;  %v2922_v42 = vld [vmem:[%s4260_s1 + $0x184] ss:$8 sps:$4 sm:$0xff]  }
  0x2c   :  { %1783 = vmatpush1.bf16.msra.mxu0 %v2837_v43  ;;  %1661 = vmatprep.subr.bf16.mxu1 %v2838_v44  ;;  %v2925_v43 = vld [vmem:[%s4260_s1 + $0x484] ss:$8 sps:$4 sm:$0xff]   ;;  %v2920_v44 = vld [vmem:[%s4260_s1 + $0x180] ss:$8 sps:$4 sm:$0xff]  }
  0x2d   :  { %1784 = vmatprep.subr.bf16.mxu0 %v2840_v45  ;;  %v2923_v45 = vld [vmem:[%s4260_s1 + $0x480] ss:$8 sps:$4 sm:$0xff]  }
  0x2f   :  { %1662 = vmatpush1.bf16.msra.mxu1 %v2842_v47  ;;  %v2931_v47 = vld [vmem:[%s4260_s1 + $0x494] ss:$8 sps:$4 sm:$0xff]  }
  0x30   :  { %1785 = vmatpush1.bf16.msra.mxu0 %v2843_v49  ;;  %1663 = vmatprep.subr.bf16.mxu1 %v2844_v51  ;;  %v2929_v49 = vld [vmem:[%s4260_s1 + $0x490] ss:$8 sps:$4 sm:$0xff]   ;;  %v2937_v51 = vld [vmem:[%s4260_s1 + $0x4a4] ss:$8 sps:$4 sm:$0xff]  }
  0x31   :  { %1786 = vmatprep.subr.bf16.mxu0 %v2846_v52  ;;  %v2932_v52 = vld [vmem:[%s4260_s1 + $0x1a0] ss:$8 sps:$4 sm:$0xff]  }
  0x33   :  { %1664 = vmatpush1.bf16.msra.mxu1 %v2848_v54  ;;  %v2940_v54 = vld [vmem:[%s4260_s1 + $0x1b4] ss:$8 sps:$4 sm:$0xff]  }
  0x34   :  { %1787 = vmatpush1.bf16.msra.mxu0 %v2849_v55  ;;  %1665 = vmatprep.subr.bf16.mxu1 %v2850_v56  ;;  %v2943_v55 = vld [vmem:[%s4260_s1 + $0x4b4] ss:$8 sps:$4 sm:$0xff]   ;;  %v2938_v56 = vld [vmem:[%s4260_s1 + $0x1b0] ss:$8 sps:$4 sm:$0xff]  }
  0x35   :  { %1788 = vmatprep.subr.bf16.mxu0 %v2852_v57  ;;  %v2941_v57 = vld [vmem:[%s4260_s1 + $0x4b0] ss:$8 sps:$4 sm:$0xff]  }
  0x37   :  { %1666 = vmatpush1.bf16.msra.mxu1 %v2854_v58  ;;  %v2946_v58 = vld [vmem:[%s4260_s1 + $0x1c4] ss:$8 sps:$4 sm:$0xff]  }
  0x38   :  { %1789 = vmatpush1.bf16.msra.mxu0 %v2855_v59  ;;  %1667 = vmatprep.subr.bf16.mxu1 %v2856_v60  ;;  %v2949_v59 = vld [vmem:[%s4260_s1 + $0x4c4] ss:$8 sps:$4 sm:$0xff]   ;;  %v2944_v60 = vld [vmem:[%s4260_s1 + $0x1c0] ss:$8 sps:$4 sm:$0xff]  }
  0x39   :  { %1790 = vmatprep.subr.bf16.mxu0 %v2858_v61  ;;  %v2947_v61 = vld [vmem:[%s4260_s1 + $0x4c0] ss:$8 sps:$4 sm:$0xff]  }
  0x3b   :  { %1668 = vmatpush1.bf16.msra.mxu1 %v2860_v62  ;;  %v2952_v62 = vld [vmem:[%s4260_s1 + $0x1d4] ss:$8 sps:$4 sm:$0xff]  }
  0x3c   :  { %1791 = vmatpush1.bf16.msra.mxu0 %v2861_v63  ;;  %1669 = vmatprep.subr.bf16.mxu1 %v2862_v0  ;;  %v2955_v63 = vld [vmem:[%s4260_s1 + $0x4d4] ss:$8 sps:$4 sm:$0xff]   ;;  %v2950_v0 = vld [vmem:[%s4260_s1 + $0x1d0] ss:$8 sps:$4 sm:$0xff]  }
  0x3d   :  { %1792 = vmatprep.subr.bf16.mxu0 %v2864_v1  ;;  %v2953_v1 = vld [vmem:[%s4260_s1 + $0x4d0] ss:$8 sps:$4 sm:$0xff]  }
  0x3f   :  { %1670 = vmatpush1.bf16.msra.mxu1 %v2866_v2  ;;  %v2958_v2 = vld [vmem:[%s4260_s1 + $0x1e4] ss:$8 sps:$4 sm:$0xff]  }
  0x40   :  { %1793 = vmatpush1.bf16.msra.mxu0 %v2867_v3  ;;  %1680 = vmatprep.subr.bf16.mxu1 %v2872_v4  ;;  %v2961_v3 = vld [vmem:[%s4260_s1 + $0x4e4] ss:$8 sps:$4 sm:$0xff]   ;;  %v2956_v4 = vld [vmem:[%s4260_s1 + $0x1e0] ss:$8 sps:$4 sm:$0xff]  }
  0x41   :  { %1803 = vmatprep.subr.bf16.mxu0 %v2877_v5  ;;  %v2959_v5 = vld [vmem:[%s4260_s1 + $0x4e0] ss:$8 sps:$4 sm:$0xff]  }
  0x42   :  { %1672 = vmatmul.mubr.bf16.vlgmr.msra.gmra.mrb[0].mxu1 %v2401_v6  ;;  %v2964_v6 = vld [vmem:[%s4260_s1 + $0x1f4] ss:$8 sps:$4 sm:$0xff]  }
  0x43   :  { %1795 = vmatmul.mubr.bf16.vlgmr.msra.gmra.mrb[0].mxu0 %v2407_v7  ;;  %1681 = vmatpush1.bf16.msra.mxu1 %v2870_v8  ;;  %v2967_v7 = vld [vmem:[%s4260_s1 + $0x4f4] ss:$8 sps:$4 sm:$0xff]   ;;  %v2962_v8 = vld [vmem:[%s4260_s1 + $0x1f0] ss:$8 sps:$4 sm:$0xff]  }
  0x44   :  { %1804 = vmatpush1.bf16.msra.mxu0 %v2875_v9  ;;  %1682 = vmatprep.subr.bf16.mxu1 %v2880_v10  ;;  %v2965_v9 = vld [vmem:[%s4260_s1 + $0x4f0] ss:$8 sps:$4 sm:$0xff]   ;;  %v2972_v10 = vld [vmem:[%s4260_s1 + $0x204] ss:$8 sps:$4 sm:$0xff]  }
  0x45   :  { %1805 = vmatprep.subr.bf16.mxu0 %v2883_v11  ;;  %1712 = vmatprep.mubr.bf16.mxu1 %v2404_v35  ;;  %v2977_v11 = vld [vmem:[%s4260_s1 + $0x504] ss:$8 sps:$4 sm:$0xff]   ;;  %v2999_v35 = vld [vmem:[%s4260_s1 + $0x540] ss:$8 sps:$4 sm:$0xff]  }
  0x46   :  { %1835 = vmatprep.mubr.bf16.mxu0 %v2410_v38  ;;  %v3002_v38 = vld [vmem:[%s4260_s1 + $0x250] ss:$8 sps:$4 sm:$0xff]  }
  0x47   :  { %1683 = vmatpush1.bf16.msra.mxu1 %v2878_v12  ;;  %v2403_v12 = vcombine.low %v3555_v32, %v3555_v32  ;;  %v2998_v32 = vld [vmem:[%s4260_s1 + $0x244] ss:$8 sps:$4 sm:$0xff]  }
  0x48   :  { %1806 = vmatpush1.bf16.msra.mxu0 %v2881_v13  ;;  %1684 = vmatprep.subr.bf16.mxu1 %v2886_v14  ;;  %v2970_v13 = vld [vmem:[%s4260_s1 + $0x200] ss:$8 sps:$4 sm:$0xff]   ;;  %v2409_v14 = vcombine.low %v3568_v36, %v3568_v36  ;;  %v3004_v36 = vld [vmem:[%s4260_s1 + $0x254] ss:$8 sps:$4 sm:$0xff]  }
  0x49   :  { %1807 = vmatprep.subr.bf16.mxu0 %v2889_v15  ;;  %v2975_v15 = vld [vmem:[%s4260_s1 + $0x500] ss:$8 sps:$4 sm:$0xff]  }
  0x4b   :  { %1685 = vmatpush1.bf16.msra.mxu1 %v2884_v16  ;;  %v2980_v16 = vld [vmem:[%s4260_s1 + $0x214] ss:$8 sps:$4 sm:$0xff]  }
  0x4c   :  { %1808 = vmatpush1.bf16.msra.mxu0 %v2887_v17  ;;  %1686 = vmatprep.subr.bf16.mxu1 %v2892_v18  ;;  %v2983_v17 = vld [vmem:[%s4260_s1 + $0x514] ss:$8 sps:$4 sm:$0xff]  }
  0x4d   :  { %1809 = vmatprep.subr.bf16.mxu0 %v2895_v19  ;;  %v3705_v18 = vld [vmem:[%s4261_s0 + $0x10] sm:$0xff]  ;;  %v3710_v19 = vld [vmem:[%s4261_s0 + $0x28] sm:$0xff] }
  0x4f   :  { %1687 = vmatpush1.bf16.msra.mxu1 %v2890_v20  ;;  %v2406_v20 = vcombine.high %v3705_v18, %v3705_v18 }
  0x50   :  { %1810 = vmatpush1.bf16.msra.mxu0 %v2893_v21  ;;  %1688 = vmatprep.subr.bf16.mxu1 %v2898_v22  ;;  %v2412_v21 = vcombine.high %v3710_v19, %v3710_v19  ;;  %v2978_v22 = vld [vmem:[%s4260_s1 + $0x210] ss:$8 sps:$4 sm:$0xff]  }
  0x51   :  { %1811 = vmatprep.subr.bf16.mxu0 %v2901_v23  ;;  %v2981_v23 = vld [vmem:[%s4260_s1 + $0x510] ss:$8 sps:$4 sm:$0xff]  }
  0x53   :  { %1689 = vmatpush1.bf16.msra.mxu1 %v2896_v24  ;;  %v2986_v24 = vld [vmem:[%s4260_s1 + $0x224] ss:$8 sps:$4 sm:$0xff]  }
  0x54   :  { %1812 = vmatpush1.bf16.msra.mxu0 %v2899_v25  ;;  %1690 = vmatprep.subr.bf16.mxu1 %v2904_v26  ;;  %v2989_v25 = vld [vmem:[%s4260_s1 + $0x524] ss:$8 sps:$4 sm:$0xff]   ;;  %v2984_v26 = vld [vmem:[%s4260_s1 + $0x220] ss:$8 sps:$4 sm:$0xff]  }
  0x55   :  { %1813 = vmatprep.subr.bf16.mxu0 %v2907_v27  ;;  %v2987_v27 = vld [vmem:[%s4260_s1 + $0x520] ss:$8 sps:$4 sm:$0xff]  }
  0x57   :  { %1691 = vmatpush1.bf16.msra.mxu1 %v2902_v28  ;;  %v2992_v28 = vld [vmem:[%s4260_s1 + $0x234] ss:$8 sps:$4 sm:$0xff]  }
  0x58   :  { %1814 = vmatpush1.bf16.msra.mxu0 %v2905_v29  ;;  %1692 = vmatprep.subr.bf16.mxu1 %v2910_v30  ;;  %v2995_v29 = vld [vmem:[%s4260_s1 + $0x534] ss:$8 sps:$4 sm:$0xff]   ;;  %v2990_v30 = vld [vmem:[%s4260_s1 + $0x230] ss:$8 sps:$4 sm:$0xff]  }
  0x59   :  { %1815 = vmatprep.subr.bf16.mxu0 %v2913_v31  ;;  %v2993_v31 = vld [vmem:[%s4260_s1 + $0x530] ss:$8 sps:$4 sm:$0xff]  }
  0x5b   :  { %1693 = vmatpush1.bf16.msra.mxu1 %v2908_v33  ;;  %v3001_v33 = vld [vmem:[%s4260_s1 + $0x544] ss:$8 sps:$4 sm:$0xff]  }
  0x5c   :  { %1816 = vmatpush1.bf16.msra.mxu0 %v2911_v34  ;;  %1694 = vmatprep.subr.bf16.mxu1 %v2916_v37  ;;  %v2996_v34 = vld [vmem:[%s4260_s1 + $0x240] ss:$8 sps:$4 sm:$0xff]   ;;  %v3007_v37 = vld [vmem:[%s4260_s1 + $0x554] ss:$8 sps:$4 sm:$0xff]  }
  0x5d   :  { %1817 = vmatprep.subr.bf16.mxu0 %v2919_v39  ;;  %v3005_v39 = vld [vmem:[%s4260_s1 + $0x550] ss:$8 sps:$4 sm:$0xff]  }
  0x5f   :  { %1695 = vmatpush1.bf16.msra.mxu1 %v2914_v40  ;;  %v3010_v40 = vld [vmem:[%s4260_s1 + $0x264] ss:$8 sps:$4 sm:$0xff]  }
  0x60   :  { %1818 = vmatpush1.bf16.msra.mxu0 %v2917_v41  ;;  %1696 = vmatprep.subr.bf16.mxu1 %v2922_v42  ;;  %v3013_v41 = vld [vmem:[%s4260_s1 + $0x564] ss:$8 sps:$4 sm:$0xff]   ;;  %v3008_v42 = vld [vmem:[%s4260_s1 + $0x260] ss:$8 sps:$4 sm:$0xff]  }
  0x61   :  { %1819 = vmatprep.subr.bf16.mxu0 %v2925_v43  ;;  %v3011_v43 = vld [vmem:[%s4260_s1 + $0x560] ss:$8 sps:$4 sm:$0xff]  }
  0x63   :  { %1697 = vmatpush1.bf16.msra.mxu1 %v2920_v44  ;;  %v3016_v44 = vld [vmem:[%s4260_s1 + $0x274] ss:$8 sps:$4 sm:$0xff]  }
  0x64   :  { %1820 = vmatpush1.bf16.msra.mxu0 %v2923_v45  ;;  %1698 = vmatprep.subr.bf16.mxu1 %v2928_v46  ;;  %v3019_v45 = vld [vmem:[%s4260_s1 + $0x574] ss:$8 sps:$4 sm:$0xff]   ;;  %v3014_v46 = vld [vmem:[%s4260_s1 + $0x270] ss:$8 sps:$4 sm:$0xff]  }
  0x65   :  { %1821 = vmatprep.subr.bf16.mxu0 %v2931_v47  ;;  %v3017_v47 = vld [vmem:[%s4260_s1 + $0x570] ss:$8 sps:$4 sm:$0xff]  }
  0x67   :  { %1699 = vmatpush1.bf16.msra.mxu1 %v2926_v48  ;;  %v3022_v48 = vld [vmem:[%s4260_s1 + $0x284] ss:$8 sps:$4 sm:$0xff]  }
  0x68   :  { %1822 = vmatpush1.bf16.msra.mxu0 %v2929_v49  ;;  %1700 = vmatprep.subr.bf16.mxu1 %v2934_v50  ;;  %v3025_v49 = vld [vmem:[%s4260_s1 + $0x584] ss:$8 sps:$4 sm:$0xff]   ;;  %v3020_v50 = vld [vmem:[%s4260_s1 + $0x280] ss:$8 sps:$4 sm:$0xff]  }
  0x69   :  { %1823 = vmatprep.subr.bf16.mxu0 %v2937_v51  ;;  %v3023_v51 = vld [vmem:[%s4260_s1 + $0x580] ss:$8 sps:$4 sm:$0xff]  }
  0x6b   :  { %1701 = vmatpush1.bf16.msra.mxu1 %v2932_v52  ;;  %v3028_v52 = vld [vmem:[%s4260_s1 + $0x294] ss:$8 sps:$4 sm:$0xff]  }
  0x6c   :  { %1824 = vmatpush1.bf16.msra.mxu0 %v2935_v53  ;;  %1702 = vmatprep.subr.bf16.mxu1 %v2940_v54  ;;  %v3031_v53 = vld [vmem:[%s4260_s1 + $0x594] ss:$8 sps:$4 sm:$0xff]   ;;  %v3026_v54 = vld [vmem:[%s4260_s1 + $0x290] ss:$8 sps:$4 sm:$0xff]  }
  0x6d   :  { %1825 = vmatprep.subr.bf16.mxu0 %v2943_v55  ;;  %v3029_v55 = vld [vmem:[%s4260_s1 + $0x590] ss:$8 sps:$4 sm:$0xff]  }
  0x6f   :  { %1703 = vmatpush1.bf16.msra.mxu1 %v2938_v56  ;;  %v3034_v56 = vld [vmem:[%s4260_s1 + $0x2a4] ss:$8 sps:$4 sm:$0xff]  }
  0x70   :  { %1826 = vmatpush1.bf16.msra.mxu0 %v2941_v57  ;;  %1704 = vmatprep.subr.bf16.mxu1 %v2946_v58  ;;  %v3037_v57 = vld [vmem:[%s4260_s1 + $0x5a4] ss:$8 sps:$4 sm:$0xff]   ;;  %v3032_v58 = vld [vmem:[%s4260_s1 + $0x2a0] ss:$8 sps:$4 sm:$0xff]  }
  0x71   :  { %1827 = vmatprep.subr.bf16.mxu0 %v2949_v59  ;;  %v3035_v59 = vld [vmem:[%s4260_s1 + $0x5a0] ss:$8 sps:$4 sm:$0xff]  }
  0x73   :  { %1705 = vmatpush1.bf16.msra.mxu1 %v2944_v60  ;;  %v3040_v60 = vld [vmem:[%s4260_s1 + $0x2b4] ss:$8 sps:$4 sm:$0xff]  }
  0x74   :  { %1828 = vmatpush1.bf16.msra.mxu0 %v2947_v61  ;;  %1706 = vmatprep.subr.bf16.mxu1 %v2952_v62  ;;  %v3043_v61 = vld [vmem:[%s4260_s1 + $0x5b4] ss:$8 sps:$4 sm:$0xff]   ;;  %v3038_v62 = vld [vmem:[%s4260_s1 + $0x2b0] ss:$8 sps:$4 sm:$0xff]  }
  0x75   :  { %1829 = vmatprep.subr.bf16.mxu0 %v2955_v63  ;;  %v3041_v63 = vld [vmem:[%s4260_s1 + $0x5b0] ss:$8 sps:$4 sm:$0xff]  }
  0x77   :  { %1707 = vmatpush1.bf16.msra.mxu1 %v2950_v0  ;;  %v3046_v0 = vld [vmem:[%s4260_s1 + $0x2c4] ss:$8 sps:$4 sm:$0xff]  }
  0x78   :  { %1830 = vmatpush1.bf16.msra.mxu0 %v2953_v1  ;;  %1708 = vmatprep.subr.bf16.mxu1 %v2958_v2  ;;  %v3049_v1 = vld [vmem:[%s4260_s1 + $0x5c4] ss:$8 sps:$4 sm:$0xff]   ;;  %v3044_v2 = vld [vmem:[%s4260_s1 + $0x2c0] ss:$8 sps:$4 sm:$0xff]  }
  0x79   :  { %1831 = vmatprep.subr.bf16.mxu0 %v2961_v3  ;;  %v3047_v3 = vld [vmem:[%s4260_s1 + $0x5c0] ss:$8 sps:$4 sm:$0xff]  }
  0x7b   :  { %1709 = vmatpush1.bf16.msra.mxu1 %v2956_v4  ;;  %v3052_v4 = vld [vmem:[%s4260_s1 + $0x2d4] ss:$8 sps:$4 sm:$0xff]  }
  0x7c   :  { %1832 = vmatpush1.bf16.msra.mxu0 %v2959_v5  ;;  %1710 = vmatprep.subr.bf16.mxu1 %v2964_v6  ;;  %v3055_v5 = vld [vmem:[%s4260_s1 + $0x5d4] ss:$8 sps:$4 sm:$0xff]   ;;  %v3050_v6 = vld [vmem:[%s4260_s1 + $0x2d0] ss:$8 sps:$4 sm:$0xff]  }
  0x7d   :  { %1833 = vmatprep.subr.bf16.mxu0 %v2967_v7  ;;  %v3053_v7 = vld [vmem:[%s4260_s1 + $0x5d0] ss:$8 sps:$4 sm:$0xff]  }
  0x7f   :  { %1711 = vmatpush1.bf16.msra.mxu1 %v2962_v8  ;;  %v3058_v8 = vld [vmem:[%s4260_s1 + $0x2e4] ss:$8 sps:$4 sm:$0xff]  }
  0x80   :  { %1834 = vmatpush1.bf16.msra.mxu0 %v2965_v9  ;;  %1721 = vmatprep.subr.bf16.mxu1 %v2972_v10  ;;  %v3061_v9 = vld [vmem:[%s4260_s1 + $0x5e4] ss:$8 sps:$4 sm:$0xff]   ;;  %v3056_v10 = vld [vmem:[%s4260_s1 + $0x2e0] ss:$8 sps:$4 sm:$0xff]  }
  0x81   :  { %1844 = vmatprep.subr.bf16.mxu0 %v2977_v11  ;;  %v3059_v11 = vld [vmem:[%s4260_s1 + $0x5e0] ss:$8 sps:$4 sm:$0xff]  }
  0x82   :  { %1713 = vmatmul.mubr.bf16.vlgmr.msra.gmra.mrb[0].mxu1 %v2403_v12  ;;  %v3064_v12 = vld [vmem:[%s4260_s1 + $0x2f4] ss:$8 sps:$4 sm:$0xff]  }
  0x83   :  { %1836 = vmatmul.mubr.bf16.vlgmr.msra.gmra.mrb[0].mxu0 %v2409_v14  ;;  %1722 = vmatpush1.bf16.msra.mxu1 %v2970_v13  ;;  %v3067_v13 = vld [vmem:[%s4260_s1 + $0x5f4] ss:$8 sps:$4 sm:$0xff]   ;;  %v3062_v14 = vld [vmem:[%s4260_s1 + $0x2f0] ss:$8 sps:$4 sm:$0xff]  }
  0x84   :  { %1845 = vmatpush1.bf16.msra.mxu0 %v2975_v15  ;;  %1723 = vmatprep.subr.bf16.mxu1 %v2980_v16  ;;  %v3065_v15 = vld [vmem:[%s4260_s1 + $0x5f0] ss:$8 sps:$4 sm:$0xff]   ;;  %v3074_v16 = vld [vmem:[%s4260_s1 + $0x604] ss:$8 sps:$4 sm:$0xff]  }
  0x85   :  { %1846 = vmatprep.subr.bf16.mxu0 %v2983_v17  ;;  %1753 = vmatprep.mubr.bf16.mxu1 %v2406_v20  ;;  %v3896_v17 = vld [vmem:[%s4261_s0 + $0x30] sm:$0xff]  ;;  %v2405_v20 = vcombine.low %v3705_v18, %v3705_v18 }
  0x86   :  { %1876 = vmatprep.mubr.bf16.mxu0 %v2412_v21  ;;  %v2411_v21 = vcombine.low %v3710_v19, %v3710_v19  ;;  %v3075_v18 = vld [vmem:[%s4260_s1 + $0x610] ss:$8 sps:$4 sm:$0xff]   ;;  %v3080_v19 = vld [vmem:[%s4260_s1 + $0x624] ss:$8 sps:$4 sm:$0xff]  }
  0x87   :  { %1724 = vmatpush1.bf16.msra.mxu1 %v2978_v22  ;;  %v3072_v22 = vld [vmem:[%s4260_s1 + $0x600] ss:$8 sps:$4 sm:$0xff]  }
  0x88   :  { %1847 = vmatpush1.bf16.msra.mxu0 %v2981_v23  ;;  %1725 = vmatprep.subr.bf16.mxu1 %v2986_v24  ;;  %v2414_v23 = vcombine.high %v3896_v17, %v3896_v17  ;;  %v3077_v24 = vld [vmem:[%s4260_s1 + $0x614] ss:$8 sps:$4 sm:$0xff]  }
  0x89   :  { %1848 = vmatprep.subr.bf16.mxu0 %v2989_v25  ;;  %v3078_v25 = vld [vmem:[%s4260_s1 + $0x620] ss:$8 sps:$4 sm:$0xff]  }
  0x8b   :  { %1726 = vmatpush1.bf16.msra.mxu1 %v2984_v26  ;;  %v3083_v26 = vld [vmem:[%s4260_s1 + $0x634] ss:$8 sps:$4 sm:$0xff]  }
  0x8c   :  { %1849 = vmatpush1.bf16.msra.mxu0 %v2987_v27  ;;  %1727 = vmatprep.subr.bf16.mxu1 %v2992_v28  ;;  %v3081_v27 = vld [vmem:[%s4260_s1 + $0x630] ss:$8 sps:$4 sm:$0xff]   ;;  %v3086_v28 = vld [vmem:[%s4260_s1 + $0x644] ss:$8 sps:$4 sm:$0xff]  }
  0x8d   :  { %1850 = vmatprep.subr.bf16.mxu0 %v2995_v29  ;;  %v3084_v29 = vld [vmem:[%s4260_s1 + $0x640] ss:$8 sps:$4 sm:$0xff]  }
  0x8f   :  { %1728 = vmatpush1.bf16.msra.mxu1 %v2990_v30  ;;  %v3089_v30 = vld [vmem:[%s4260_s1 + $0x654] ss:$8 sps:$4 sm:$0xff]  }
  0x90   :  { %1851 = vmatpush1.bf16.msra.mxu0 %v2993_v31  ;;  %1729 = vmatprep.subr.bf16.mxu1 %v2998_v32  ;;  %v3087_v31 = vld [vmem:[%s4260_s1 + $0x650] ss:$8 sps:$4 sm:$0xff]   ;;  %v3092_v32 = vld [vmem:[%s4260_s1 + $0x664] ss:$8 sps:$4 sm:$0xff]  }
  0x91   :  { %1852 = vmatprep.subr.bf16.mxu0 %v3001_v33  ;;  %v3090_v33 = vld [vmem:[%s4260_s1 + $0x660] ss:$8 sps:$4 sm:$0xff]  }
  0x93   :  { %1730 = vmatpush1.bf16.msra.mxu1 %v2996_v34  ;;  %v3095_v34 = vld [vmem:[%s4260_s1 + $0x674] ss:$8 sps:$4 sm:$0xff]  }
  0x94   :  { %1853 = vmatpush1.bf16.msra.mxu0 %v2999_v35  ;;  %1731 = vmatprep.subr.bf16.mxu1 %v3004_v36  ;;  %v3093_v35 = vld [vmem:[%s4260_s1 + $0x670] ss:$8 sps:$4 sm:$0xff]   ;;  %v3098_v36 = vld [vmem:[%s4260_s1 + $0x684] ss:$8 sps:$4 sm:$0xff]  }
  0x95   :  { %1854 = vmatprep.subr.bf16.mxu0 %v3007_v37  ;;  %v3096_v37 = vld [vmem:[%s4260_s1 + $0x680] ss:$8 sps:$4 sm:$0xff]  }
  0x97   :  { %1732 = vmatpush1.bf16.msra.mxu1 %v3002_v38  ;;  %v3101_v38 = vld [vmem:[%s4260_s1 + $0x694] ss:$8 sps:$4 sm:$0xff]  }
  0x98   :  { %1855 = vmatpush1.bf16.msra.mxu0 %v3005_v39  ;;  %1733 = vmatprep.subr.bf16.mxu1 %v3010_v40  ;;  %v3099_v39 = vld [vmem:[%s4260_s1 + $0x690] ss:$8 sps:$4 sm:$0xff]   ;;  %v3104_v40 = vld [vmem:[%s4260_s1 + $0x6a4] ss:$8 sps:$4 sm:$0xff]  }
  0x99   :  { %1856 = vmatprep.subr.bf16.mxu0 %v3013_v41  ;;  %v3102_v41 = vld [vmem:[%s4260_s1 + $0x6a0] ss:$8 sps:$4 sm:$0xff]  }
  0x9b   :  { %1734 = vmatpush1.bf16.msra.mxu1 %v3008_v42  ;;  %v3107_v42 = vld [vmem:[%s4260_s1 + $0x6b4] ss:$8 sps:$4 sm:$0xff]  }
  0x9c   :  { %1857 = vmatpush1.bf16.msra.mxu0 %v3011_v43  ;;  %1735 = vmatprep.subr.bf16.mxu1 %v3016_v44  ;;  %v3105_v43 = vld [vmem:[%s4260_s1 + $0x6b0] ss:$8 sps:$4 sm:$0xff]   ;;  %v3110_v44 = vld [vmem:[%s4260_s1 + $0x6c4] ss:$8 sps:$4 sm:$0xff]  }
  0x9d   :  { %1858 = vmatprep.subr.bf16.mxu0 %v3019_v45  ;;  %v3108_v45 = vld [vmem:[%s4260_s1 + $0x6c0] ss:$8 sps:$4 sm:$0xff]  }
  0x9f   :  { %1736 = vmatpush1.bf16.msra.mxu1 %v3014_v46  ;;  %v3113_v46 = vld [vmem:[%s4260_s1 + $0x6d4] ss:$8 sps:$4 sm:$0xff]  }
  0xa0   :  { %1859 = vmatpush1.bf16.msra.mxu0 %v3017_v47  ;;  %1737 = vmatprep.subr.bf16.mxu1 %v3022_v48  ;;  %v3111_v47 = vld [vmem:[%s4260_s1 + $0x6d0] ss:$8 sps:$4 sm:$0xff]   ;;  %v3116_v48 = vld [vmem:[%s4260_s1 + $0x6e4] ss:$8 sps:$4 sm:$0xff]  }
  0xa1   :  { %1860 = vmatprep.subr.bf16.mxu0 %v3025_v49  ;;  %v3114_v49 = vld [vmem:[%s4260_s1 + $0x6e0] ss:$8 sps:$4 sm:$0xff]  }
  0xa3   :  { %1738 = vmatpush1.bf16.msra.mxu1 %v3020_v50  ;;  %v3119_v50 = vld [vmem:[%s4260_s1 + $0x6f4] ss:$8 sps:$4 sm:$0xff]  }
  0xa4   :  { %1861 = vmatpush1.bf16.msra.mxu0 %v3023_v51  ;;  %1739 = vmatprep.subr.bf16.mxu1 %v3028_v52  ;;  %v3117_v51 = vld [vmem:[%s4260_s1 + $0x6f0] ss:$8 sps:$4 sm:$0xff]   ;;  %v3124_v52 = vld [vmem:[%s4260_s1 + $0x704] ss:$8 sps:$4 sm:$0xff]  }
  0xa5   :  { %1862 = vmatprep.subr.bf16.mxu0 %v3031_v53  ;;  %v4003_v53 = vld [vmem:[%s4261_s0 + $0x38] sm:$0xff] }
  0xa7   :  { %1740 = vmatpush1.bf16.msra.mxu1 %v3026_v54  ;;  %v2413_v54 = vcombine.low %v3896_v17, %v3896_v17  ;;  %v3149_v17 = vld [vmem:[%s4260_s1 + $0x790] ss:$8 sps:$4 sm:$0xff]  }
  0xa8   :  { %1863 = vmatpush1.bf16.msra.mxu0 %v3029_v55  ;;  %1741 = vmatprep.subr.bf16.mxu1 %v3034_v56  ;;  %v3122_v55 = vld [vmem:[%s4260_s1 + $0x700] ss:$8 sps:$4 sm:$0xff]   ;;  %v2416_v56 = vcombine.high %v4003_v53, %v4003_v53 }
  0xa9   :  { %1864 = vmatprep.subr.bf16.mxu0 %v3037_v57  ;;  %v3127_v57 = vld [vmem:[%s4260_s1 + $0x714] ss:$8 sps:$4 sm:$0xff]  }
  0xab   :  { %1742 = vmatpush1.bf16.msra.mxu1 %v3032_v58  ;;  %v3125_v58 = vld [vmem:[%s4260_s1 + $0x710] ss:$8 sps:$4 sm:$0xff]  }
  0xac   :  { %1865 = vmatpush1.bf16.msra.mxu0 %v3035_v59  ;;  %1743 = vmatprep.subr.bf16.mxu1 %v3040_v60  ;;  %v3130_v59 = vld [vmem:[%s4260_s1 + $0x724] ss:$8 sps:$4 sm:$0xff]   ;;  %v3128_v60 = vld [vmem:[%s4260_s1 + $0x720] ss:$8 sps:$4 sm:$0xff]  }
  0xad   :  { %1866 = vmatprep.subr.bf16.mxu0 %v3043_v61  ;;  %v3133_v61 = vld [vmem:[%s4260_s1 + $0x734] ss:$8 sps:$4 sm:$0xff]  }
  0xaf   :  { %1744 = vmatpush1.bf16.msra.mxu1 %v3038_v62  ;;  %v3131_v62 = vld [vmem:[%s4260_s1 + $0x730] ss:$8 sps:$4 sm:$0xff]  }
  0xb0   :  { %1867 = vmatpush1.bf16.msra.mxu0 %v3041_v63  ;;  %1745 = vmatprep.subr.bf16.mxu1 %v3046_v0  ;;  %v3136_v63 = vld [vmem:[%s4260_s1 + $0x744] ss:$8 sps:$4 sm:$0xff]   ;;  %v3134_v0 = vld [vmem:[%s4260_s1 + $0x740] ss:$8 sps:$4 sm:$0xff]  }
  0xb1   :  { %1868 = vmatprep.subr.bf16.mxu0 %v3049_v1  ;;  %v3139_v1 = vld [vmem:[%s4260_s1 + $0x754] ss:$8 sps:$4 sm:$0xff]  }
  0xb3   :  { %1746 = vmatpush1.bf16.msra.mxu1 %v3044_v2  ;;  %v3137_v2 = vld [vmem:[%s4260_s1 + $0x750] ss:$8 sps:$4 sm:$0xff]  }
  0xb4   :  { %1869 = vmatpush1.bf16.msra.mxu0 %v3047_v3  ;;  %1747 = vmatprep.subr.bf16.mxu1 %v3052_v4  ;;  %v3142_v3 = vld [vmem:[%s4260_s1 + $0x764] ss:$8 sps:$4 sm:$0xff]   ;;  %v3140_v4 = vld [vmem:[%s4260_s1 + $0x760] ss:$8 sps:$4 sm:$0xff]  }
  0xb5   :  { %1870 = vmatprep.subr.bf16.mxu0 %v3055_v5  ;;  %v3145_v5 = vld [vmem:[%s4260_s1 + $0x774] ss:$8 sps:$4 sm:$0xff]  }
  0xb7   :  { %1748 = vmatpush1.bf16.msra.mxu1 %v3050_v6  ;;  %v3172_v6 = vld [vmem:[%s4262_s3] ss:$8 sps:$4 sm:$0xff]  }
  0xb8   :  { %1871 = vmatpush1.bf16.msra.mxu0 %v3053_v7  ;;  %1749 = vmatprep.subr.bf16.mxu1 %v3058_v8  ;;  %v3174_v7 = vld [vmem:[%s4262_s3 + $0x4] ss:$8 sps:$4 sm:$0xff]   ;;  %v3143_v8 = vld [vmem:[%s4260_s1 + $0x770] ss:$8 sps:$4 sm:$0xff]  }
  0xb9   :  { %1872 = vmatprep.subr.bf16.mxu0 %v3061_v9  ;;  %v3177_v9 = vld [vmem:[%s4262_s3 + $0x14] ss:$8 sps:$4 sm:$0xff]  }
  0xbb   :  { %1750 = vmatpush1.bf16.msra.mxu1 %v3056_v10  ;;  %v3148_v10 = vld [vmem:[%s4260_s1 + $0x784] ss:$8 sps:$4 sm:$0xff]  }
  0xbc   :  { %1873 = vmatpush1.bf16.msra.mxu0 %v3059_v11  ;;  %1751 = vmatprep.subr.bf16.mxu1 %v3064_v12  ;;  %v3175_v11 = vld [vmem:[%s4262_s3 + $0x10] ss:$8 sps:$4 sm:$0xff]   ;;  %v3180_v12 = vld [vmem:[%s4262_s3 + $0x24] ss:$8 sps:$4 sm:$0xff]  }
  0xbd   :  { %1874 = vmatprep.subr.bf16.mxu0 %v3067_v13  ;;  %v3146_v13 = vld [vmem:[%s4260_s1 + $0x780] ss:$8 sps:$4 sm:$0xff]  }
  0xbf   :  { %1752 = vmatpush1.bf16.msra.mxu1 %v3062_v14  ;;  %v3151_v14 = vld [vmem:[%s4260_s1 + $0x794] ss:$8 sps:$4 sm:$0xff]  }
  0xc0   :  { %1875 = vmatpush1.bf16.msra.mxu0 %v3065_v15  ;;  %2175 = vmatprep.subr.bf16.mxu1 %v3174_v7  ;;  %v3178_v15 = vld [vmem:[%s4262_s3 + $0x20] ss:$8 sps:$4 sm:$0xff]  }
  0xc1   :  { %1885 = vmatprep.subr.bf16.mxu0 %v3074_v16  ;;  %v3183_v16 = vld [vmem:[%s4262_s3 + $0x34] ss:$8 sps:$4 sm:$0xff]  }
  0xc2   :  { %1754 = vmatmul.mubr.bf16.vlgmr.msra.gmra.mrb[0].mxu1 %v2405_v20  ;;  %v3154_v20 = vld [vmem:[%s4260_s1 + $0x7a4] ss:$8 sps:$4 sm:$0xff]  }
  0xc3   :  { %1877 = vmatmul.mubr.bf16.vlgmr.msra.gmra.mrb[0].mxu0 %v2411_v21  ;;  %2176 = vmatpush1.bf16.msra.mxu1 %v3172_v6  ;;  %v3181_v21 = vld [vmem:[%s4262_s3 + $0x30] ss:$8 sps:$4 sm:$0xff]  }
  0xc4   :  { %1886 = vmatpush1.bf16.msra.mxu0 %v3072_v22  ;;  %1917 = vmatprep.mubr.bf16.mxu0 %v2414_v23  ;;  %v3186_v22 = vld [vmem:[%s4262_s3 + $0x44] ss:$8 sps:$4 sm:$0xff]   ;;  %v3152_v23 = vld [vmem:[%s4260_s1 + $0x7a0] ss:$8 sps:$4 sm:$0xff]  }
  0xc5   :  { %1887 = vmatprep.subr.bf16.mxu0 %v3077_v24  ;;  %2177 = vmatprep.subr.bf16.mxu1 %v3177_v9  ;;  %v3157_v24 = vld [vmem:[%s4260_s1 + $0x7b4] ss:$8 sps:$4 sm:$0xff]  }
  0xc7   :  { %2178 = vmatpush1.bf16.msra.mxu1 %v3175_v11 }
  0xc8   :  { %1888 = vmatpush1.bf16.msra.mxu0 %v3075_v18  ;;  %2179 = vmatprep.subr.bf16.mxu1 %v3180_v12  ;;  %v3184_v18 = vld [vmem:[%s4262_s3 + $0x40] ss:$8 sps:$4 sm:$0xff]  }
  0xc9   :  { %1889 = vmatprep.subr.bf16.mxu0 %v3080_v19  ;;  %v3189_v19 = vld [vmem:[%s4262_s3 + $0x54] ss:$8 sps:$4 sm:$0xff]  }
  0xcb   :  { %2180 = vmatpush1.bf16.msra.mxu1 %v3178_v15  ;;  %v3221_v15 = vld [vmem:[%s4263_s5] sm:$0xff]  }
  0xcc   :  { %1890 = vmatpush1.bf16.msra.mxu0 %v3078_v25  ;;  %2181 = vmatprep.subr.bf16.mxu1 %v3183_v16  ;;  %v3155_v25 = vld [vmem:[%s4260_s1 + $0x7b0] ss:$8 sps:$4 sm:$0xff]  }
  0xcd   :  { %1891 = vmatprep.subr.bf16.mxu0 %v3083_v26  ;;  %v3160_v26 = vld [vmem:[%s4260_s1 + $0x7c4] ss:$8 sps:$4 sm:$0xff]  }
  0xcf   :  { %2182 = vmatpush1.bf16.msra.mxu1 %v3181_v21  ;;  %v3224_v21 = vld [vmem:[%s4263_s5 + $0x50] sm:$0xff]  }
  0xd0   :  { %1892 = vmatpush1.bf16.msra.mxu0 %v3081_v27  ;;  %2183 = vmatprep.subr.bf16.mxu1 %v3186_v22  ;;  %v3187_v27 = vld [vmem:[%s4262_s3 + $0x50] ss:$8 sps:$4 sm:$0xff]  }
  0xd1   :  { %1893 = vmatprep.subr.bf16.mxu0 %v3086_v28  ;;  %v3192_v28 = vld [vmem:[%s4262_s3 + $0x64] ss:$8 sps:$4 sm:$0xff]   ;;  %v3225_v22 = vld [vmem:[%s4263_s5 + $0x10] sm:$0xff]  }
  0xd3   :  { %2184 = vmatpush1.bf16.msra.mxu1 %v3184_v18  ;;  %v3228_v18 = vld [vmem:[%s4263_s5 + $0x60] sm:$0xff]  }
  0xd4   :  { %1894 = vmatpush1.bf16.msra.mxu0 %v3084_v29  ;;  %2185 = vmatprep.subr.bf16.mxu1 %v3189_v19  ;;  %v3158_v29 = vld [vmem:[%s4260_s1 + $0x7c0] ss:$8 sps:$4 sm:$0xff]  }
  0xd5   :  { %1895 = vmatprep.subr.bf16.mxu0 %v3089_v30  ;;  %v3163_v30 = vld [vmem:[%s4260_s1 + $0x7d4] ss:$8 sps:$4 sm:$0xff]   ;;  %v3229_v19 = vld [vmem:[%s4263_s5 + $0x20] sm:$0xff]  }
  0xd7   :  { %2186 = vmatpush1.bf16.msra.mxu1 %v3187_v27  ;;  %v3232_v27 = vld [vmem:[%s4263_s5 + $0x70] sm:$0xff]  }
  0xd8   :  { %1896 = vmatpush1.bf16.msra.mxu0 %v3087_v31  ;;  %v3190_v31 = vld [vmem:[%s4262_s3 + $0x60] ss:$8 sps:$4 sm:$0xff]   ;;  %2187 = vmatprep.subr.bf16.mxu1 %v3192_v28  ;;  %v3233_v28 = vld [vmem:[%s4263_s5 + $0x30] sm:$0xff]  }
  0xd9   :  { %1897 = vmatprep.subr.bf16.mxu0 %v3092_v32  ;;  %v3195_v32 = vld [vmem:[%s4262_s3 + $0x74] ss:$8 sps:$4 sm:$0xff]  }
  0xdb   :  { %2188 = vmatpush1.bf16.msra.mxu1 %v3190_v31  ;;  %v2003_v31 = vld [vmem:[%s4265_s4] sm:$0x3] }
  0xdc   :  { %1898 = vmatpush1.bf16.msra.mxu0 %v3090_v33  ;;  %v3161_v33 = vld [vmem:[%s4260_s1 + $0x7d0] ss:$8 sps:$4 sm:$0xff]   ;;  %2189 = vmatprep.subr.bf16.mxu1 %v3195_v32 }
  0xdd   :  { %1899 = vmatprep.subr.bf16.mxu0 %v3095_v34  ;;  %v3166_v34 = vld [vmem:[%s4260_s1 + $0x7e4] ss:$8 sps:$4 sm:$0xff]  }
  0xe0   :  { %1900 = vmatpush1.bf16.msra.mxu0 %v3093_v35  ;;  %v3193_v35 = vld [vmem:[%s4262_s3 + $0x70] ss:$8 sps:$4 sm:$0xff]  }
  0xe1   :  { %1901 = vmatprep.subr.bf16.mxu0 %v3098_v36  ;;  %v3198_v36 = vld [vmem:[%s4262_s3 + $0x84] ss:$8 sps:$4 sm:$0xff]   ;;  %2190 = vmatpush1.bf16.msra.mxu1 %v3193_v35 }
  0xe2   :  { %2191 = vmatprep.subr.bf16.mxu1 %v3198_v36 }
  0xe4   :  { %1902 = vmatpush1.bf16.msra.mxu0 %v3096_v37  ;;  %v3164_v37 = vld [vmem:[%s4260_s1 + $0x7e0] ss:$8 sps:$4 sm:$0xff]  }
  0xe5   :  { %1903 = vmatprep.subr.bf16.mxu0 %v3101_v38  ;;  %v3169_v38 = vld [vmem:[%s4260_s1 + $0x7f4] ss:$8 sps:$4 sm:$0xff]  }
  0xe8   :  { %1904 = vmatpush1.bf16.msra.mxu0 %v3099_v39  ;;  %v3196_v39 = vld [vmem:[%s4262_s3 + $0x80] ss:$8 sps:$4 sm:$0xff]  }
  0xe9   :  { %1905 = vmatprep.subr.bf16.mxu0 %v3104_v40  ;;  %v3201_v40 = vld [vmem:[%s4262_s3 + $0x94] ss:$8 sps:$4 sm:$0xff]   ;;  %2192 = vmatpush1.bf16.msra.mxu1 %v3196_v39 }
  0xea   :  { %2193 = vmatprep.subr.bf16.mxu1 %v3201_v40 }
  0xec   :  { %1906 = vmatpush1.bf16.msra.mxu0 %v3102_v41  ;;  %v3167_v41 = vld [vmem:[%s4260_s1 + $0x7f0] ss:$8 sps:$4 sm:$0xff]  }
  0xed   :  { %1907 = vmatprep.subr.bf16.mxu0 %v3107_v42  ;;  %v3199_v42 = vld [vmem:[%s4262_s3 + $0x90] ss:$8 sps:$4 sm:$0xff]  }
  0xee   :  { %2194 = vmatpush1.bf16.msra.mxu1 %v3199_v42 }
  0xf0   :  { %1908 = vmatpush1.bf16.msra.mxu0 %v3105_v43  ;;  %v2415_v43 = vcombine.low %v4003_v53, %v4003_v53 }
  0xf1   :  { %1909 = vmatprep.subr.bf16.mxu0 %v3110_v44  ;;  %v3204_v44 = vld [vmem:[%s4262_s3 + $0xa4] ss:$8 sps:$4 sm:$0xff]  }
  0xf2   :  { %2195 = vmatprep.subr.bf16.mxu1 %v3204_v44 }
  0xf4   :  { %1910 = vmatpush1.bf16.msra.mxu0 %v3108_v45  ;;  %v3202_v45 = vld [vmem:[%s4262_s3 + $0xa0] ss:$8 sps:$4 sm:$0xff]  }
  0xf5   :  { %1911 = vmatprep.subr.bf16.mxu0 %v3113_v46  ;;  %v3207_v46 = vld [vmem:[%s4262_s3 + $0xb4] ss:$8 sps:$4 sm:$0xff]   ;;  %2196 = vmatpush1.bf16.msra.mxu1 %v3202_v45  ;;  %v2705_v45 = vld [vmem:[%s4266_s6] ss:$0 sm:$0xff] }
  0xf6   :  { %2197 = vmatprep.subr.bf16.mxu1 %v3207_v46 }
  0xf8   :  { %1912 = vmatpush1.bf16.msra.mxu0 %v3111_v47  ;;  %v3205_v47 = vld [vmem:[%s4262_s3 + $0xb0] ss:$8 sps:$4 sm:$0xff]  }
  0xf9   :  { %1913 = vmatprep.subr.bf16.mxu0 %v3116_v48  ;;  %v3210_v48 = vld [vmem:[%s4262_s3 + $0xc4] ss:$8 sps:$4 sm:$0xff]   ;;  %2198 = vmatpush1.bf16.msra.mxu1 %v3205_v47 }
  0xfa   :  { %2199 = vmatprep.subr.bf16.mxu1 %v3210_v48 }
  0xfc   :  { %1914 = vmatpush1.bf16.msra.mxu0 %v3114_v49  ;;  %v3208_v49 = vld [vmem:[%s4262_s3 + $0xc0] ss:$8 sps:$4 sm:$0xff]  }
  0xfd   :  { %1915 = vmatprep.subr.bf16.mxu0 %v3119_v50  ;;  %v3213_v50 = vld [vmem:[%s4262_s3 + $0xd4] ss:$8 sps:$4 sm:$0xff]   ;;  %2200 = vmatpush1.bf16.msra.mxu1 %v3208_v49 }
  0xfe   :  { %2201 = vmatprep.subr.bf16.mxu1 %v3213_v50 }
 0x100   :  { %1916 = vmatpush1.bf16.msra.mxu0 %v3117_v51  ;;  %v3211_v51 = vld [vmem:[%s4262_s3 + $0xd0] ss:$8 sps:$4 sm:$0xff]  }
 0x101   :  { %1926 = vmatprep.subr.bf16.mxu0 %v3124_v52  ;;  %2202 = vmatpush1.bf16.msra.mxu1 %v3211_v51  ;;  %v3216_v52 = vld [vmem:[%s4262_s3 + $0xe4] ss:$8 sps:$4 sm:$0xff]  }
 0x102   :  { %2203 = vmatprep.subr.bf16.mxu1 %v3216_v52 }
 0x103   :  { %1918 = vmatmul.mubr.bf16.vlgmr.msra.gmra.mrb[0].mxu0 %v2413_v54  ;;  %v3214_v54 = vld [vmem:[%s4262_s3 + $0xe0] ss:$8 sps:$4 sm:$0xff]  }
 0x104   :  { %1927 = vmatpush1.bf16.msra.mxu0 %v3122_v55  ;;  %1958 = vmatprep.mubr.bf16.mxu0 %v2416_v56 }
 0x105   :  { %1928 = vmatprep.subr.bf16.mxu0 %v3127_v57  ;;  %2204 = vmatpush1.bf16.msra.mxu1 %v3214_v54 }
 0x108   :  { %1929 = vmatpush1.bf16.msra.mxu0 %v3125_v58  ;;  %v3219_v58 = vld [vmem:[%s4262_s3 + $0xf4] ss:$8 sps:$4 sm:$0xff]  }
 0x109   :  { %1930 = vmatprep.subr.bf16.mxu0 %v3130_v59  ;;  %v3217_v59 = vld [vmem:[%s4262_s3 + $0xf0] ss:$8 sps:$4 sm:$0xff]   ;;  %2205 = vmatprep.subr.bf16.mxu1 %v3219_v58 }
 0x10a   :  { %2206 = vmatpush1.bf16.msra.mxu1 %v3217_v59 }
 0x10c   :  { %1931 = vmatpush1.bf16.msra.mxu0 %v3128_v60  ;;  %v3220_v60 = vld [vmem:[%s4263_s5 + $0x40] sm:$0xff]  }
 0x10d   :  { %1932 = vmatprep.subr.bf16.mxu0 %v3133_v61  ;;  %2722 = vmatprep.subr.bf16.mxu1 %v3220_v60  ;;  %v293_v61 = vlaneseq }
 0x110   :  { %1933 = vmatpush1.bf16.msra.mxu0 %v3131_v62  ;;  %v294_v62 = vshrl.u32 %v293_v61, 7 }
 0x111   :  { %1934 = vmatprep.subr.bf16.mxu0 %v3136_v63 }
 0x112   :  { %v295_v63 = vsub.s32 0, %v294_v62 }
 0x114   :  { %1935 = vmatpush1.bf16.msra.mxu0 %v3134_v0  ;;  %v291_v0 = vld [vmem:[%s4264_s2] sm:$0x3]  ;;  %v2008_v32 = vrot.slane %v2003_v31, %v295_v63 }
 0x115   :  { %1936 = vmatprep.subr.bf16.mxu0 %v3139_v1  ;;  %v299_v1 = vsub.s32 1, %v294_v62 }
 0x118   :  { %1937 = vmatpush1.bf16.msra.mxu0 %v3137_v2  ;;  %v296_v2 = vrot.slane %v291_v0, %v295_v63 }
 0x119   :  { %1938 = vmatprep.subr.bf16.mxu0 %v3142_v3  ;;  %v300_v3 = vrot.slane %v291_v0, %v299_v1 }
 0x11c   :  { %1939 = vmatpush1.bf16.msra.mxu0 %v3140_v4 }
 0x11d   :  { %1940 = vmatprep.subr.bf16.mxu0 %v3145_v5 }
 0x120   :  { %1941 = vmatpush1.bf16.msra.mxu0 %v3143_v8 }
 0x121   :  { %1942 = vmatprep.subr.bf16.mxu0 %v3148_v10 }
 0x124   :  { %1943 = vmatpush1.bf16.msra.mxu0 %v3146_v13 }
 0x125   :  { %1944 = vmatprep.subr.bf16.mxu0 %v3151_v14 }
 0x128   :  { %1945 = vmatpush1.bf16.msra.mxu0 %v3149_v17  ;;  %v3222_v17 = vld [vmem:[%s4263_s5 + $0x48] sm:$0xff]  }
 0x129   :  { %1946 = vmatprep.subr.bf16.mxu0 %v3154_v20  ;;  %v3223_v20 = vld [vmem:[%s4263_s5 + $0x8] sm:$0xff]  }
 0x12c   :  { %1947 = vmatpush1.bf16.msra.mxu0 %v3152_v23  ;;  %v3226_v23 = vld [vmem:[%s4263_s5 + $0x58] sm:$0xff]  }
 0x12d   :  { %1948 = vmatprep.subr.bf16.mxu0 %v3157_v24  ;;  %v3227_v24 = vld [vmem:[%s4263_s5 + $0x18] sm:$0xff]  }
 0x130   :  { %1949 = vmatpush1.bf16.msra.mxu0 %v3155_v25  ;;  %v3230_v25 = vld [vmem:[%s4263_s5 + $0x68] sm:$0xff]  }
 0x131   :  { %1950 = vmatprep.subr.bf16.mxu0 %v3160_v26  ;;  %v3231_v26 = vld [vmem:[%s4263_s5 + $0x28] sm:$0xff]  }
 0x134   :  { %1951 = vmatpush1.bf16.msra.mxu0 %v3158_v29  ;;  %v3234_v29 = vld [vmem:[%s4263_s5 + $0x78] sm:$0xff]  }
 0x135   :  { %1952 = vmatprep.subr.bf16.mxu0 %v3163_v30  ;;  %v3235_v30 = vld [vmem:[%s4263_s5 + $0x38] sm:$0xff]  }
 0x138   :  { %1953 = vmatpush1.bf16.msra.mxu0 %v3161_v33  ;;  %v2012_v33 = vrot.slane %v2003_v31, %v299_v1 }
 0x139   :  { %1954 = vmatprep.subr.bf16.mxu0 %v3166_v34 }
 0x13c   :  { %1955 = vmatpush1.bf16.msra.mxu0 %v3164_v37 }
 0x13d   :  { %1956 = vmatprep.subr.bf16.mxu0 %v3169_v38 }
 0x140   :  { %1957 = vmatpush1.bf16.msra.mxu0 %v3167_v41 }
 0x143   :  { %1959 = vmatmul.mubr.bf16.vlgmr.msra.gmra.mrb[0].mxu0 %v2415_v43 }
 0x195   :  { %v1755_v53 = vpop.f32.mrb[0].mxu1 }
 0x196   :  { %v1757_v55 = vpop.f32.mrb[1].mxu1  ;;  %v2744_v4 = vadd.f32 %v1755_v53, %v296_v2 }
 0x197   :  { %v1759_v56 = vpop.f32.mrb[2].mxu1  ;;  %v2746_v5 = vadd.f32 %v1757_v55, %v300_v3 }
 0x198   :  { %v1760_v57 = vpop.f32.mrb[3].mxu1 }
 0x216   :  { %v1960_v6 = vpop.f32.mrb[0].mxu0 }
 0x217   :  { %v2745_v7 = vadd.f32 %v2744_v4, %v1960_v6  ;;  %v1962_v8 = vpop.f32.mrb[1].mxu0 }
 0x218   :  { %v2747_v9 = vadd.f32 %v2746_v5, %v1962_v8  ;;  %v1964_v10 = vpop.f32.mrb[2].mxu0 }
 0x219   :  { %v1967_v11 = vmax.f32 %v2745_v7, 0.0  ;;  %v1965_v12 = vpop.f32.mrb[3].mxu0 }
 0x21a   :  { %v1968_v13 = vmax.f32 %v2747_v9, 0.0 }
 0x21b   :  { %v1969_v16 = vpack.c.bf16 %v1967_v11, %v1967_v11 }
 0x21c   :  { %v1970_v14 = vpack.c.bf16 %v1968_v13, %v1968_v13 }
 0x21e   :  { %2207 = vmatprep.mubr.bf16.mxu1 %v1970_v14 }
 0x21f   :  { %2208 = vmatmul.mubr.bf16.vlgmr.msra.gmra.mrb[4].mxu1 %v1969_v16 }
 0x220   :  { %2723 = vmatpush3.bf16.msra.mxu1 %v3221_v15 }
 0x221   :  { %2724 = vmatprep.subr.bf16.mxu1 %v3222_v17 }
 0x224   :  { %2725 = vmatpush3.bf16.msra.mxu1 %v3223_v20 }
 0x225   :  { %2726 = vmatprep.subr.bf16.mxu1 %v3224_v21 }
 0x228   :  { %2727 = vmatpush3.bf16.msra.mxu1 %v3225_v22 }
 0x229   :  { %2728 = vmatprep.subr.bf16.mxu1 %v3226_v23 }
 0x22c   :  { %2729 = vmatpush3.bf16.msra.mxu1 %v3227_v24 }
 0x22d   :  { %2730 = vmatprep.subr.bf16.mxu1 %v3228_v18 }
 0x230   :  { %2731 = vmatpush3.bf16.msra.mxu1 %v3229_v19 }
 0x231   :  { %2732 = vmatprep.subr.bf16.mxu1 %v3230_v25 }
 0x234   :  { %2733 = vmatpush3.bf16.msra.mxu1 %v3231_v26 }
 0x235   :  { %2734 = vmatprep.subr.bf16.mxu1 %v3232_v27 }
 0x238   :  { %2735 = vmatpush3.bf16.msra.mxu1 %v3233_v28 }
 0x239   :  { %2736 = vmatprep.subr.bf16.mxu1 %v3234_v29 }
 0x23c   :  { %2737 = vmatpush3.bf16.msra.mxu1 %v3235_v30 }
 0x2f2   :  { %v2209_v34 = vpop.f32.mrb[4].mxu1 }
 0x2f3   :  { %v2210_v35 = vadd.f32 %v2209_v34, %v2008_v32  ;;  %v2211_v36 = vpop.f32.mrb[5].mxu1 }
 0x2f4   :  { %v2212_v37 = vadd.f32 %v2211_v36, %v2012_v33  ;;  %v2213_v38 = vpop.f32.mrb[6].mxu1 }
 0x2f5   :  { %v2216_v39 = vmax.f32 %v2210_v35, 0.0  ;;  %v2214_v40 = vpop.f32.mrb[7].mxu1 }
 0x2f6   :  { %v2217_v41 = vmax.f32 %v2212_v37, 0.0 }
 0x2f7   :  { %v2218_v43 = vpack.c.bf16 %v2216_v39, %v2216_v39 }
 0x2f8   :  { %v2219_v42 = vpack.c.bf16 %v2217_v41, %v2217_v41 }
 0x2fa   :  { %2387 = vmatprep.mubr.bf16.mxu1 %v2219_v42 }
 0x2fb   :  { %2388 = vmatmul.mubr.bf16.vlgmr.msra.gmra.mrb[8].mxu1 %v2218_v43 }
 0x3ce   :  { %v2738_v44 = vpop.f32.mrb[8].mxu1 }
 0x3cf   :  { %v2739_v46 = vpop.f32.mrb[9].mxu1 }
 0x3d0   :  { %v2740_v47 = vadd.f32 %v2739_v46, %v2738_v44  ;;  %v2741_v48 = vpop.f32.mrb[10].mxu1 }
 0x3d1   :  { %v2742_v49 = vpop.f32.mrb[11].mxu1 }
 0x3d2   :  { %v2390_v50 = vadd.f32 %v2740_v47, %v2705_v45 }
 0x3d4   :  { %v2395_v51 = vpack.c.bf16 %v2390_v50, %v2390_v50 }
 0x3d6   :  { %2396 = vst [vmem:[%s4267_s7] sm:$0xf] %v2395_v51 }

</bundles_post_ra>
